<compile_context>
chip_gen: v7x
topology: tpu7x:2x2x1
jax: 0.10.0
libtpu: 0.0.40
codegen_flags: <defaults>
</compile_context>

<pallas_src>
import functools
import math

import jax
import jax.numpy as jnp
from jax import lax
from jax.experimental import pallas as pl
from jax.experimental.pallas import tpu as pltpu


# --------------------------------------------------------------------------
# In-kernel helpers
# --------------------------------------------------------------------------
def _layernorm(x, gamma, beta, eps=1e-5):
    # x: (N, D), gamma/beta: (1, D); stats in f32
    mean = jnp.mean(x, axis=-1, keepdims=True)
    var = jnp.mean((x - mean) ** 2, axis=-1, keepdims=True)
    return (x - mean) * lax.rsqrt(var + eps) * gamma + beta


def _gelu_exact(x):
    # nn.GELU() default = exact erf-based GELU
    return 0.5 * x * (1.0 + lax.erf(x * (1.0 / math.sqrt(2.0))))


# --------------------------------------------------------------------------
# Fused per-layer kernel (one grid step = one (batch element, layer) pair)
#   out = x + to_out(Attention(LN1(x)));  out = out + FF(LN2(out))
# The running activation lives in acc_ref (VMEM, f32) across the layer axis.
# --------------------------------------------------------------------------
def _layer_kernel(x_ref, ln1_g_ref, ln1_b_ref, wq_ref, wk_ref, wv_ref,
                  wo_ref, bo_ref, ln2_g_ref, ln2_b_ref, w1_ref, b1_ref,
                  w2_ref, b2_ref, o_ref, acc_ref, *, heads, dim_head):
    layer = pl.program_id(1)

    # Layer 0: load this batch element's activation into the resident scratch.
    @pl.when(layer == 0)
    def _():
        acc_ref[...] = x_ref[0].astype(jnp.float32)

    x = acc_ref[...]                                      # (N, D) f32
    n_tok = x.shape[0]
    inner = heads * dim_head

    # ---- PreNorm -> Attention2 -> residual --------------------------------
    xn = _layernorm(x, ln1_g_ref[0], ln1_b_ref[0])

    def proj_heads(w_ref):
        # One big (N, D) x (D, inner) MXU matmul, then split heads.
        p = jnp.dot(xn, w_ref[0], preferred_element_type=jnp.float32)  # (N, h*dh)
        p = p.reshape(n_tok, heads, dim_head)
        return pltpu.einshape("nhd->hnd", p)                           # (h, N, dh)

    qh = proj_heads(wq_ref)
    kh = proj_heads(wk_ref)
    vh = proj_heads(wv_ref)

    # Batched (over heads) scaled-dot attention with stable softmax.
    dots = jnp.einsum("hqd,hkd->hqk", qh, kh,
                      preferred_element_type=jnp.float32) * (dim_head ** -0.5)
    dots = dots - jnp.max(dots, axis=-1, keepdims=True)
    e = jnp.exp(dots)
    attn = e * pl.reciprocal(jnp.sum(e, axis=-1, keepdims=True), approx=True)

    ctx = jnp.einsum("hqk,hkd->hqd", attn, vh,
                     preferred_element_type=jnp.float32)               # (h, N, dh)
    ctx = pltpu.einshape("hnd->nhd", ctx).reshape(n_tok, inner)        # 'b h n d -> b n (h d)'

    x = x + jnp.dot(ctx, wo_ref[0],
                    preferred_element_type=jnp.float32) + bo_ref[0]

    # ---- PreNorm -> FeedForward -> residual --------------------------------
    xn2 = _layernorm(x, ln2_g_ref[0], ln2_b_ref[0])
    h = jnp.dot(xn2, w1_ref[0], preferred_element_type=jnp.float32) + b1_ref[0]
    h = _gelu_exact(h)
    x = x + jnp.dot(h, w2_ref[0], preferred_element_type=jnp.float32) + b2_ref[0]

    acc_ref[...] = x

    # Last layer: write the final activation for this batch element to HBM.
    @pl.when(layer == pl.num_programs(1) - 1)
    def _():
        o_ref[0] = x.astype(o_ref.dtype)


# --------------------------------------------------------------------------
# pallas_call wrapper: grid = (batch [parallel], depth [arbitrary])
# --------------------------------------------------------------------------
def transformer_forward(x, params, *, heads, dim_head,
                        vmem_limit_bytes=48 * 1024 * 1024):
    B, N, D = x.shape
    depth = params["w_q"].shape[0]

    kern = functools.partial(_layer_kernel, heads=heads, dim_head=dim_head)

    def wspec(name):
        # Stacked per-layer parameter (depth, a, b): stream layer `l`'s slice.
        s = params[name].shape
        return pl.BlockSpec((1, s[1], s[2]), lambda b, l: (l, 0, 0))

    grid_spec = pltpu.PrefetchScalarGridSpec(
        num_scalar_prefetch=0,
        grid=(B, depth),
        in_specs=[
            pl.BlockSpec((1, N, D), lambda b, l: (b, 0, 0)),    # x (read at l==0)
            wspec("ln1_g"), wspec("ln1_b"),
            wspec("w_q"), wspec("w_k"), wspec("w_v"),
            wspec("w_out"), wspec("b_out"),
            wspec("ln2_g"), wspec("ln2_b"),
            wspec("w1"), wspec("b1"), wspec("w2"), wspec("b2"),
        ],
        out_specs=pl.BlockSpec((1, N, D), lambda b, l: (b, 0, 0)),
        scratch_shapes=[pltpu.VMEM((N, D), jnp.float32)],        # resident activation
    )

    return pl.pallas_call(
        kern,
        out_shape=jax.ShapeDtypeStruct((B, N, D), x.dtype),
        grid_spec=grid_spec,
        compiler_params=pltpu.CompilerParams(
            dimension_semantics=("parallel", "arbitrary"),
            vmem_limit_bytes=vmem_limit_bytes),
    )(x,
      params["ln1_g"], params["ln1_b"],
      params["w_q"], params["w_k"], params["w_v"],
      params["w_out"], params["b_out"],
      params["ln2_g"], params["ln2_b"],
      params["w1"], params["b1"], params["w2"], params["b2"])


# --------------------------------------------------------------------------
# Parameter construction (all layers stacked along a leading `depth` dim)
# --------------------------------------------------------------------------
def init_transformer_params(key, dim, depth, heads, dim_head, mlp_dim,
                            dtype=jnp.float32):
    inner = heads * dim_head
    ks = jax.random.split(key, 9)

    def w(k, shape, fan_in):
        return jax.random.normal(k, shape, dtype) * (1.0 / math.sqrt(fan_in))

    return {
        "ln1_g": 1.0 + 0.1 * jax.random.normal(ks[0], (depth, 1, dim), dtype),
        "ln1_b": 0.1 * jax.random.normal(ks[1], (depth, 1, dim), dtype),
        "w_q": w(ks[2], (depth, dim, inner), dim),
        "w_k": w(ks[3], (depth, dim, inner), dim),
        "w_v": w(ks[4], (depth, dim, inner), dim),
        "w_out": w(ks[5], (depth, inner, dim), inner),
        "b_out": jnp.zeros((depth, 1, dim), dtype),
        "ln2_g": 1.0 + 0.1 * jax.random.normal(ks[6], (depth, 1, dim), dtype),
        "ln2_b": 0.1 * jax.random.normal(ks[7], (depth, 1, dim), dtype),
        "w1": w(ks[8], (depth, dim, mlp_dim), dim),
        "b1": jnp.zeros((depth, 1, mlp_dim), dtype),
        "w2": w(jax.random.fold_in(key, 123), (depth, mlp_dim, dim), mlp_dim),
        "b2": jnp.zeros((depth, 1, dim), dtype),
    }


# --------------------------------------------------------------------------
# Pure-JAX reference (same math) for a sanity check
# --------------------------------------------------------------------------
def _ref_forward(x, params, *, heads, dim_head):
    def ln(x, g, b, eps=1e-5):
        m = jnp.mean(x, -1, keepdims=True)
        v = jnp.mean((x - m) ** 2, -1, keepdims=True)
        return (x - m) / jnp.sqrt(v + eps) * g + b

    B, N, _ = x.shape
    inner = heads * dim_head
    depth = params["w_q"].shape[0]
    for l in range(depth):
        xn = ln(x, params["ln1_g"][l], params["ln1_b"][l])
        q = xn @ params["w_q"][l]
        k = xn @ params["w_k"][l]
        v = xn @ params["w_v"][l]
        rs = lambda t: t.reshape(B, N, heads, dim_head).transpose(0, 2, 1, 3)
        q, k, v = rs(q), rs(k), rs(v)
        dots = jnp.einsum("bhnd,bhmd->bhnm", q, k) * (dim_head ** -0.5)
        attn = jax.nn.softmax(dots, axis=-1)
        out = jnp.einsum("bhnm,bhmd->bhnd", attn, v)
        out = out.transpose(0, 2, 1, 3).reshape(B, N, inner)
        x = out @ params["w_out"][l] + params["b_out"][l] + x

        xn = ln(x, params["ln2_g"][l], params["ln2_b"][l])
        h = jax.nn.gelu(xn @ params["w1"][l] + params["b1"][l], approximate=False)
        x = h @ params["w2"][l] + params["b2"][l] + x
    return x


# --------------------------------------------------------------------------
if __name__ == "__main__":
    # Small, lane/sublane-dense config: dim=128, depth=2, heads=4, dim_head=32
    B, N, DIM = 2, 16, 128
    DEPTH, HEADS, DIM_HEAD, MLP_DIM = 2, 4, 32, 256

    key = jax.random.PRNGKey(0)
    kx, kp = jax.random.split(key)
    x = jax.random.normal(kx, (B, N, DIM), jnp.float32)
    params = init_transformer_params(kp, DIM, DEPTH, HEADS, DIM_HEAD, MLP_DIM)

    fwd = jax.jit(functools.partial(transformer_forward,
                                    heads=HEADS, dim_head=DIM_HEAD))
    out = jax.block_until_ready(fwd(x, params))

    ref = _ref_forward(x, params, heads=HEADS, dim_head=DIM_HEAD)
    assert out.shape == (B, N, DIM)
    err = float(jnp.max(jnp.abs(out - ref)))
    # Tolerance relaxed (vs 1e-4) solely because the softmax denominator uses the
    # EUP approximate reciprocal (pl.reciprocal(approx=True)); all other math is f32.
    assert err < 2e-2, f"mismatch vs reference: max abs err = {err}"

    # TODO(synk): dropout (p=0.0 here) and the heads==1 & dim_head==dim
    # Identity-to_out corner case are not modeled (not exercised by this config).
    print("KERNEL_OK")
</pallas_src>

<mosaic_0001>
module attributes {stable_mosaic.version = 11 : i64} {
  func.func @_layer_kernel(%arg0: i32, %arg1: i32, %arg2: memref<1x16x128xf32, #tpu.memory_space<vmem>>, %arg3: memref<1x1x128xf32, #tpu.memory_space<vmem>>, %arg4: memref<1x1x128xf32, #tpu.memory_space<vmem>>, %arg5: memref<1x128x128xf32, #tpu.memory_space<vmem>>, %arg6: memref<1x128x128xf32, #tpu.memory_space<vmem>>, %arg7: memref<1x128x128xf32, #tpu.memory_space<vmem>>, %arg8: memref<1x128x128xf32, #tpu.memory_space<vmem>>, %arg9: memref<1x1x128xf32, #tpu.memory_space<vmem>>, %arg10: memref<1x1x128xf32, #tpu.memory_space<vmem>>, %arg11: memref<1x1x128xf32, #tpu.memory_space<vmem>>, %arg12: memref<1x128x256xf32, #tpu.memory_space<vmem>>, %arg13: memref<1x1x256xf32, #tpu.memory_space<vmem>>, %arg14: memref<1x256x128xf32, #tpu.memory_space<vmem>>, %arg15: memref<1x1x128xf32, #tpu.memory_space<vmem>>, %arg16: memref<1x16x128xf32, #tpu.memory_space<vmem>>, %arg17: memref<16x128xf32, #tpu.memory_space<vmem>>) attributes {dimension_semantics = [#tpu.dimension_semantics<parallel>, #tpu.dimension_semantics<arbitrary>], iteration_bounds = array<i64: 2, 2>, scalar_prefetch = 0 : i64, scratch_operands = 1 : i64, tpu.core_type = #tpu.core_type<tc>, window_params = [{transform_indices = @transform_0, window_bounds = array<i64: 1, 16, 128>}, {transform_indices = @transform_1, window_bounds = array<i64: 1, 1, 128>}, {transform_indices = @transform_2, window_bounds = array<i64: 1, 1, 128>}, {transform_indices = @transform_3, window_bounds = array<i64: 1, 128, 128>}, {transform_indices = @transform_4, window_bounds = array<i64: 1, 128, 128>}, {transform_indices = @transform_5, window_bounds = array<i64: 1, 128, 128>}, {transform_indices = @transform_6, window_bounds = array<i64: 1, 128, 128>}, {transform_indices = @transform_7, window_bounds = array<i64: 1, 1, 128>}, {transform_indices = @transform_8, window_bounds = array<i64: 1, 1, 128>}, {transform_indices = @transform_9, window_bounds = array<i64: 1, 1, 128>}, {transform_indices = @transform_10, window_bounds = array<i64: 1, 128, 256>}, {transform_indices = @transform_11, window_bounds = array<i64: 1, 1, 256>}, {transform_indices = @transform_12, window_bounds = array<i64: 1, 256, 128>}, {transform_indices = @transform_13, window_bounds = array<i64: 1, 1, 128>}, {transform_indices = @transform_14, window_bounds = array<i64: 1, 16, 128>}]} {
    %c0_i32 = arith.constant 0 : i32
    %0 = arith.cmpi eq, %arg1, %c0_i32 : i32
    %1 = arith.extui %0 : i1 to i32
    %c0_i32_0 = arith.constant 0 : i32
    %2 = arith.cmpi ne, %1, %c0_i32_0 : i32
    scf.if %2 {
      %c0_67 = arith.constant 0 : index
      %c0_68 = arith.constant 0 : index
      %c0_69 = arith.constant 0 : index
      %122 = vector.load %arg2[%c0_67, %c0_68, %c0_69] : memref<1x16x128xf32, #tpu.memory_space<vmem>>, vector<1x16x128xf32>
      %123 = vector.shape_cast %122 : vector<1x16x128xf32> to vector<16x128xf32>
      %c0_70 = arith.constant 0 : index
      %c0_71 = arith.constant 0 : index
      %124 = vector.load %arg17[%c0_70, %c0_71] : memref<16x128xf32, #tpu.memory_space<vmem>>, vector<16x128xf32>
      tpu.vector_store %arg17[%c0_70, %c0_71], %123 {strides = array<i32>} : memref<16x128xf32, #tpu.memory_space<vmem>>, vector<16x128xf32>,
    } else {
    }
    %c0 = arith.constant 0 : index
    %c0_1 = arith.constant 0 : index
    %3 = vector.load %arg17[%c0, %c0_1] : memref<16x128xf32, #tpu.memory_space<vmem>>, vector<16x128xf32>
    %c0_2 = arith.constant 0 : index
    %c0_3 = arith.constant 0 : index
    %c0_4 = arith.constant 0 : index
    %4 = vector.load %arg3[%c0_2, %c0_3, %c0_4] : memref<1x1x128xf32, #tpu.memory_space<vmem>>, vector<1x1x128xf32>
    %5 = vector.shape_cast %4 : vector<1x1x128xf32> to vector<1x128xf32>
    %c0_5 = arith.constant 0 : index
    %c0_6 = arith.constant 0 : index
    %c0_7 = arith.constant 0 : index
    %6 = vector.load %arg4[%c0_5, %c0_6, %c0_7] : memref<1x1x128xf32, #tpu.memory_space<vmem>>, vector<1x1x128xf32>
    %7 = vector.shape_cast %6 : vector<1x1x128xf32> to vector<1x128xf32>
    %cst = arith.constant dense<0.000000e+00> : vector<16xf32>
    %8 = vector.multi_reduction <add>, %3, %cst [1] : vector<16x128xf32> to vector<16xf32>
    %9 = vector.shape_cast %8 : vector<16xf32> to vector<16x1xf32>
    %cst_8 = arith.constant 1.280000e+02 : f32
    %10 = vector.broadcast %cst_8 : f32 to vector<16x1xf32>
    %11 = arith.divf %9, %10 : vector<16x1xf32>
    %12 = vector.broadcast %11 : vector<16x1xf32> to vector<16x128xf32>
    %13 = arith.subf %3, %12 : vector<16x128xf32>
    %14 = arith.mulf %13, %13 : vector<16x128xf32>
    %cst_9 = arith.constant dense<0.000000e+00> : vector<16xf32>
    %15 = vector.multi_reduction <add>, %14, %cst_9 [1] : vector<16x128xf32> to vector<16xf32>
    %16 = vector.shape_cast %15 : vector<16xf32> to vector<16x1xf32>
    %cst_10 = arith.constant 1.280000e+02 : f32
    %17 = vector.broadcast %cst_10 : f32 to vector<16x1xf32>
    %18 = arith.divf %16, %17 : vector<16x1xf32>
    %19 = vector.broadcast %11 : vector<16x1xf32> to vector<16x128xf32>
    %20 = arith.subf %3, %19 : vector<16x128xf32>
    %cst_11 = arith.constant 9.99999974E-6 : f32
    %21 = vector.broadcast %cst_11 : f32 to vector<16x1xf32>
    %22 = arith.addf %18, %21 : vector<16x1xf32>
    %23 = math.rsqrt %22 : vector<16x1xf32>
    %24 = vector.broadcast %23 : vector<16x1xf32> to vector<16x128xf32>
    %25 = arith.mulf %20, %24 : vector<16x128xf32>
    %26 = vector.broadcast %5 : vector<1x128xf32> to vector<16x128xf32>
    %27 = arith.mulf %25, %26 : vector<16x128xf32>
    %28 = vector.broadcast %7 : vector<1x128xf32> to vector<16x128xf32>
    %29 = arith.addf %27, %28 : vector<16x128xf32>
    %c0_12 = arith.constant 0 : index
    %c0_13 = arith.constant 0 : index
    %c0_14 = arith.constant 0 : index
    %30 = vector.load %arg5[%c0_12, %c0_13, %c0_14] : memref<1x128x128xf32, #tpu.memory_space<vmem>>, vector<1x128x128xf32>
    %31 = vector.shape_cast %30 : vector<1x128x128xf32> to vector<128x128xf32>
    %cst_15 = arith.constant dense<0.000000e+00> : vector<16x128xf32>
    %32 = tpu.matmul %29, %31, %cst_15 {dimension_numbers = #tpu.dot_dimension_numbers<[1], [0], [0], [1], [0, 0, 1, 1], [], []>} : vector<16x128xf32>, vector<128x128xf32>, vector<16x128xf32> -> vector<16x128xf32>
    %33 = vector.shape_cast %32 : vector<16x128xf32> to vector<16x4x32xf32>
    %34 = tpu.transpose %33, [1, 0, 2] : vector<16x4x32xf32> -> vector<4x16x32xf32>
    %c0_16 = arith.constant 0 : index
    %c0_17 = arith.constant 0 : index
    %c0_18 = arith.constant 0 : index
    %35 = vector.load %arg6[%c0_16, %c0_17, %c0_18] : memref<1x128x128xf32, #tpu.memory_space<vmem>>, vector<1x128x128xf32>
    %36 = vector.shape_cast %35 : vector<1x128x128xf32> to vector<128x128xf32>
    %cst_19 = arith.constant dense<0.000000e+00> : vector<16x128xf32>
    %37 = tpu.matmul %29, %36, %cst_19 {dimension_numbers = #tpu.dot_dimension_numbers<[1], [0], [0], [1], [0, 0, 1, 1], [], []>} : vector<16x128xf32>, vector<128x128xf32>, vector<16x128xf32> -> vector<16x128xf32>
    %38 = vector.shape_cast %37 : vector<16x128xf32> to vector<16x4x32xf32>
    %39 = tpu.transpose %38, [1, 0, 2] : vector<16x4x32xf32> -> vector<4x16x32xf32>
    %c0_20 = arith.constant 0 : index
    %c0_21 = arith.constant 0 : index
    %c0_22 = arith.constant 0 : index
    %40 = vector.load %arg7[%c0_20, %c0_21, %c0_22] : memref<1x128x128xf32, #tpu.memory_space<vmem>>, vector<1x128x128xf32>
    %41 = vector.shape_cast %40 : vector<1x128x128xf32> to vector<128x128xf32>
    %cst_23 = arith.constant dense<0.000000e+00> : vector<16x128xf32>
    %42 = tpu.matmul %29, %41, %cst_23 {dimension_numbers = #tpu.dot_dimension_numbers<[1], [0], [0], [1], [0, 0, 1, 1], [], []>} : vector<16x128xf32>, vector<128x128xf32>, vector<16x128xf32> -> vector<16x128xf32>
    %43 = vector.shape_cast %42 : vector<16x128xf32> to vector<16x4x32xf32>
    %44 = tpu.transpose %43, [1, 0, 2] : vector<16x4x32xf32> -> vector<4x16x32xf32>
    "tpu.trace_start"() <{level = 10 : i32, message = "hqd,hkd->hqk"}> : () -> ()
    %cst_24 = arith.constant dense<0.000000e+00> : vector<4x16x16xf32>
    %45 = tpu.matmul %34, %39, %cst_24 {dimension_numbers = #tpu.dot_dimension_numbers<[2], [2], [1], [1], [0, 0, 0, 1, 1, 1], [0], [0]>} : vector<4x16x32xf32>, vector<4x16x32xf32>, vector<4x16x16xf32> -> vector<4x16x16xf32>
    "tpu.trace_stop"() : () -> ()
    %cst_25 = arith.constant 0.176776692 : f32
    %46 = vector.broadcast %cst_25 : f32 to vector<4x16x16xf32>
    %47 = arith.mulf %45, %46 : vector<4x16x16xf32>
    %cst_26 = arith.constant dense<0xFF800000> : vector<4x16xf32>
    %48 = vector.multi_reduction <maximumf>, %47, %cst_26 [2] : vector<4x16x16xf32> to vector<4x16xf32>
    %49 = vector.shape_cast %48 : vector<4x16xf32> to vector<4x16x1xf32>
    %50 = vector.broadcast %49 : vector<4x16x1xf32> to vector<4x16x16xf32>
    %51 = arith.subf %47, %50 : vector<4x16x16xf32>
    %52 = math.exp %51 : vector<4x16x16xf32>
    %cst_27 = arith.constant dense<0.000000e+00> : vector<4x16xf32>
    %53 = vector.multi_reduction <add>, %52, %cst_27 [2] : vector<4x16x16xf32> to vector<4x16xf32>
    %54 = vector.shape_cast %53 : vector<4x16xf32> to vector<4x16x1xf32>
    %55 = tpu.reciprocal %54 {approx = true} : vector<4x16x1xf32> -> vector<4x16x1xf32>
    %56 = vector.broadcast %55 : vector<4x16x1xf32> to vector<4x16x16xf32>
    %57 = arith.mulf %52, %56 : vector<4x16x16xf32>
    "tpu.trace_start"() <{level = 10 : i32, message = "hqk,hkd->hqd"}> : () -> ()
    %cst_28 = arith.constant dense<0.000000e+00> : vector<4x16x32xf32>
    %58 = tpu.matmul %57, %44, %cst_28 {dimension_numbers = #tpu.dot_dimension_numbers<[2], [1], [1], [2], [0, 0, 0, 1, 1, 2], [0], [0]>} : vector<4x16x16xf32>, vector<4x16x32xf32>, vector<4x16x32xf32> -> vector<4x16x32xf32>
    "tpu.trace_stop"() : () -> ()
    %59 = tpu.transpose %58, [1, 0, 2] : vector<4x16x32xf32> -> vector<16x4x32xf32>
    %60 = vector.shape_cast %59 : vector<16x4x32xf32> to vector<16x128xf32>
    %c0_29 = arith.constant 0 : index
    %c0_30 = arith.constant 0 : index
    %c0_31 = arith.constant 0 : index
    %61 = vector.load %arg8[%c0_29, %c0_30, %c0_31] : memref<1x128x128xf32, #tpu.memory_space<vmem>>, vector<1x128x128xf32>
    %62 = vector.shape_cast %61 : vector<1x128x128xf32> to vector<128x128xf32>
    %cst_32 = arith.constant dense<0.000000e+00> : vector<16x128xf32>
    %63 = tpu.matmul %60, %62, %cst_32 {dimension_numbers = #tpu.dot_dimension_numbers<[1], [0], [0], [1], [0, 0, 1, 1], [], []>} : vector<16x128xf32>, vector<128x128xf32>, vector<16x128xf32> -> vector<16x128xf32>
    %64 = arith.addf %3, %63 : vector<16x128xf32>
    %c0_33 = arith.constant 0 : index
    %c0_34 = arith.constant 0 : index
    %c0_35 = arith.constant 0 : index
    %65 = vector.load %arg9[%c0_33, %c0_34, %c0_35] : memref<1x1x128xf32, #tpu.memory_space<vmem>>, vector<1x1x128xf32>
    %66 = vector.shape_cast %65 : vector<1x1x128xf32> to vector<1x128xf32>
    %67 = vector.broadcast %66 : vector<1x128xf32> to vector<16x128xf32>
    %68 = arith.addf %64, %67 : vector<16x128xf32>
    %c0_36 = arith.constant 0 : index
    %c0_37 = arith.constant 0 : index
    %c0_38 = arith.constant 0 : index
    %69 = vector.load %arg10[%c0_36, %c0_37, %c0_38] : memref<1x1x128xf32, #tpu.memory_space<vmem>>, vector<1x1x128xf32>
    %70 = vector.shape_cast %69 : vector<1x1x128xf32> to vector<1x128xf32>
    %c0_39 = arith.constant 0 : index
    %c0_40 = arith.constant 0 : index
    %c0_41 = arith.constant 0 : index
    %71 = vector.load %arg11[%c0_39, %c0_40, %c0_41] : memref<1x1x128xf32, #tpu.memory_space<vmem>>, vector<1x1x128xf32>
    %72 = vector.shape_cast %71 : vector<1x1x128xf32> to vector<1x128xf32>
    %cst_42 = arith.constant dense<0.000000e+00> : vector<16xf32>
    %73 = vector.multi_reduction <add>, %68, %cst_42 [1] : vector<16x128xf32> to vector<16xf32>
    %74 = vector.shape_cast %73 : vector<16xf32> to vector<16x1xf32>
    %cst_43 = arith.constant 1.280000e+02 : f32
    %75 = vector.broadcast %cst_43 : f32 to vector<16x1xf32>
    %76 = arith.divf %74, %75 : vector<16x1xf32>
    %77 = vector.broadcast %76 : vector<16x1xf32> to vector<16x128xf32>
    %78 = arith.subf %68, %77 : vector<16x128xf32>
    %79 = arith.mulf %78, %78 : vector<16x128xf32>
    %cst_44 = arith.constant dense<0.000000e+00> : vector<16xf32>
    %80 = vector.multi_reduction <add>, %79, %cst_44 [1] : vector<16x128xf32> to vector<16xf32>
    %81 = vector.shape_cast %80 : vector<16xf32> to vector<16x1xf32>
    %cst_45 = arith.constant 1.280000e+02 : f32
    %82 = vector.broadcast %cst_45 : f32 to vector<16x1xf32>
    %83 = arith.divf %81, %82 : vector<16x1xf32>
    %84 = vector.broadcast %76 : vector<16x1xf32> to vector<16x128xf32>
    %85 = arith.subf %68, %84 : vector<16x128xf32>
    %cst_46 = arith.constant 9.99999974E-6 : f32
    %86 = vector.broadcast %cst_46 : f32 to vector<16x1xf32>
    %87 = arith.addf %83, %86 : vector<16x1xf32>
    %88 = math.rsqrt %87 : vector<16x1xf32>
    %89 = vector.broadcast %88 : vector<16x1xf32> to vector<16x128xf32>
    %90 = arith.mulf %85, %89 : vector<16x128xf32>
    %91 = vector.broadcast %70 : vector<1x128xf32> to vector<16x128xf32>
    %92 = arith.mulf %90, %91 : vector<16x128xf32>
    %93 = vector.broadcast %72 : vector<1x128xf32> to vector<16x128xf32>
    %94 = arith.addf %92, %93 : vector<16x128xf32>
    %c0_47 = arith.constant 0 : index
    %c0_48 = arith.constant 0 : index
    %c0_49 = arith.constant 0 : index
    %95 = vector.load %arg12[%c0_47, %c0_48, %c0_49] : memref<1x128x256xf32, #tpu.memory_space<vmem>>, vector<1x128x256xf32>
    %96 = vector.shape_cast %95 : vector<1x128x256xf32> to vector<128x256xf32>
    %cst_50 = arith.constant dense<0.000000e+00> : vector<16x256xf32>
    %97 = tpu.matmul %94, %96, %cst_50 {dimension_numbers = #tpu.dot_dimension_numbers<[1], [0], [0], [1], [0, 0, 1, 1], [], []>} : vector<16x128xf32>, vector<128x256xf32>, vector<16x256xf32> -> vector<16x256xf32>
    %c0_51 = arith.constant 0 : index
    %c0_52 = arith.constant 0 : index
    %c0_53 = arith.constant 0 : index
    %98 = vector.load %arg13[%c0_51, %c0_52, %c0_53] : memref<1x1x256xf32, #tpu.memory_space<vmem>>, vector<1x1x256xf32>
    %99 = vector.shape_cast %98 : vector<1x1x256xf32> to vector<1x256xf32>
    %100 = vector.broadcast %99 : vector<1x256xf32> to vector<16x256xf32>
    %101 = arith.addf %97, %100 : vector<16x256xf32>
    %cst_54 = arith.constant 5.000000e-01 : f32
    %102 = vector.broadcast %cst_54 : f32 to vector<16x256xf32>
    %103 = arith.mulf %102, %101 : vector<16x256xf32>
    %cst_55 = arith.constant 0.707106769 : f32
    %104 = vector.broadcast %cst_55 : f32 to vector<16x256xf32>
    %105 = arith.mulf %101, %104 : vector<16x256xf32>
    %106 = math.erf %105 : vector<16x256xf32>
    %cst_56 = arith.constant 1.000000e+00 : f32
    %107 = vector.broadcast %cst_56 : f32 to vector<16x256xf32>
    %108 = arith.addf %107, %106 : vector<16x256xf32>
    %109 = arith.mulf %103, %108 : vector<16x256xf32>
    %c0_57 = arith.constant 0 : index
    %c0_58 = arith.constant 0 : index
    %c0_59 = arith.constant 0 : index
    %110 = vector.load %arg14[%c0_57, %c0_58, %c0_59] : memref<1x256x128xf32, #tpu.memory_space<vmem>>, vector<1x256x128xf32>
    %111 = vector.shape_cast %110 : vector<1x256x128xf32> to vector<256x128xf32>
    %cst_60 = arith.constant dense<0.000000e+00> : vector<16x128xf32>
    %112 = tpu.matmul %109, %111, %cst_60 {dimension_numbers = #tpu.dot_dimension_numbers<[1], [0], [0], [1], [0, 0, 1, 1], [], []>} : vector<16x256xf32>, vector<256x128xf32>, vector<16x128xf32> -> vector<16x128xf32>
    %113 = arith.addf %68, %112 : vector<16x128xf32>
    %c0_61 = arith.constant 0 : index
    %c0_62 = arith.constant 0 : index
    %c0_63 = arith.constant 0 : index
    %114 = vector.load %arg15[%c0_61, %c0_62, %c0_63] : memref<1x1x128xf32, #tpu.memory_space<vmem>>, vector<1x1x128xf32>
    %115 = vector.shape_cast %114 : vector<1x1x128xf32> to vector<1x128xf32>
    %116 = vector.broadcast %115 : vector<1x128xf32> to vector<16x128xf32>
    %117 = arith.addf %113, %116 : vector<16x128xf32>
    %c0_64 = arith.constant 0 : index
    %c0_65 = arith.constant 0 : index
    %118 = vector.load %arg17[%c0_64, %c0_65] : memref<16x128xf32, #tpu.memory_space<vmem>>, vector<16x128xf32>
    tpu.vector_store %arg17[%c0_64, %c0_65], %117 {strides = array<i32>} : memref<16x128xf32, #tpu.memory_space<vmem>>, vector<16x128xf32>,
    %c1_i32 = arith.constant 1 : i32
    %119 = arith.cmpi eq, %arg1, %c1_i32 : i32
    %120 = arith.extui %119 : i1 to i32
    %c0_i32_66 = arith.constant 0 : i32
    %121 = arith.cmpi ne, %120, %c0_i32_66 : i32
    scf.if %121 {
      %c0_67 = arith.constant 0 : index
      %c0_68 = arith.constant 0 : index
      %c0_69 = arith.constant 0 : index
      %122 = vector.load %arg16[%c0_67, %c0_68, %c0_69] : memref<1x16x128xf32, #tpu.memory_space<vmem>>, vector<1x16x128xf32>
      %123 = vector.shape_cast %122 : vector<1x16x128xf32> to vector<16x128xf32>
      %124 = vector.shape_cast %117 : vector<16x128xf32> to vector<1x16x128xf32>
      tpu.vector_store %arg16[%c0_67, %c0_68, %c0_69], %124 {strides = array<i32>} : memref<1x16x128xf32, #tpu.memory_space<vmem>>, vector<1x16x128xf32>,
    } else {
    }
    return
  }
  func.func @transform_0(%arg0: i32, %arg1: i32) -> (i32, i32, i32) {
    %c0_i32 = arith.constant 0 : i32
    %c0_i32_0 = arith.constant 0 : i32
    %c0_i32_1 = arith.constant 0 : i32
    return %arg0, %c0_i32, %c0_i32_0 : i32, i32, i32
  }
  func.func @transform_1(%arg0: i32, %arg1: i32) -> (i32, i32, i32) {
    %c0_i32 = arith.constant 0 : i32
    %c0_i32_0 = arith.constant 0 : i32
    %c0_i32_1 = arith.constant 0 : i32
    return %arg1, %c0_i32, %c0_i32_0 : i32, i32, i32
  }
  func.func @transform_2(%arg0: i32, %arg1: i32) -> (i32, i32, i32) {
    %c0_i32 = arith.constant 0 : i32
    %c0_i32_0 = arith.constant 0 : i32
    %c0_i32_1 = arith.constant 0 : i32
    return %arg1, %c0_i32, %c0_i32_0 : i32, i32, i32
  }
  func.func @transform_3(%arg0: i32, %arg1: i32) -> (i32, i32, i32) {
    %c0_i32 = arith.constant 0 : i32
    %c0_i32_0 = arith.constant 0 : i32
    %c0_i32_1 = arith.constant 0 : i32
    return %arg1, %c0_i32, %c0_i32_0 : i32, i32, i32
  }
  func.func @transform_4(%arg0: i32, %arg1: i32) -> (i32, i32, i32) {
    %c0_i32 = arith.constant 0 : i32
    %c0_i32_0 = arith.constant 0 : i32
    %c0_i32_1 = arith.constant 0 : i32
    return %arg1, %c0_i32, %c0_i32_0 : i32, i32, i32
  }
  func.func @transform_5(%arg0: i32, %arg1: i32) -> (i32, i32, i32) {
    %c0_i32 = arith.constant 0 : i32
    %c0_i32_0 = arith.constant 0 : i32
    %c0_i32_1 = arith.constant 0 : i32
    return %arg1, %c0_i32, %c0_i32_0 : i32, i32, i32
  }
  func.func @transform_6(%arg0: i32, %arg1: i32) -> (i32, i32, i32) {
    %c0_i32 = arith.constant 0 : i32
    %c0_i32_0 = arith.constant 0 : i32
    %c0_i32_1 = arith.constant 0 : i32
    return %arg1, %c0_i32, %c0_i32_0 : i32, i32, i32
  }
  func.func @transform_7(%arg0: i32, %arg1: i32) -> (i32, i32, i32) {
    %c0_i32 = arith.constant 0 : i32
    %c0_i32_0 = arith.constant 0 : i32
    %c0_i32_1 = arith.constant 0 : i32
    return %arg1, %c0_i32, %c0_i32_0 : i32, i32, i32
  }
  func.func @transform_8(%arg0: i32, %arg1: i32) -> (i32, i32, i32) {
    %c0_i32 = arith.constant 0 : i32
    %c0_i32_0 = arith.constant 0 : i32
    %c0_i32_1 = arith.constant 0 : i32
    return %arg1, %c0_i32, %c0_i32_0 : i32, i32, i32
  }
  func.func @transform_9(%arg0: i32, %arg1: i32) -> (i32, i32, i32) {
    %c0_i32 = arith.constant 0 : i32
    %c0_i32_0 = arith.constant 0 : i32
    %c0_i32_1 = arith.constant 0 : i32
    return %arg1, %c0_i32, %c0_i32_0 : i32, i32, i32
  }
  func.func @transform_10(%arg0: i32, %arg1: i32) -> (i32, i32, i32) {
    %c0_i32 = arith.constant 0 : i32
    %c0_i32_0 = arith.constant 0 : i32
    %c0_i32_1 = arith.constant 0 : i32
    return %arg1, %c0_i32, %c0_i32_0 : i32, i32, i32
  }
  func.func @transform_11(%arg0: i32, %arg1: i32) -> (i32, i32, i32) {
    %c0_i32 = arith.constant 0 : i32
    %c0_i32_0 = arith.constant 0 : i32
    %c0_i32_1 = arith.constant 0 : i32
    return %arg1, %c0_i32, %c0_i32_0 : i32, i32, i32
  }
  func.func @transform_12(%arg0: i32, %arg1: i32) -> (i32, i32, i32) {
    %c0_i32 = arith.constant 0 : i32
    %c0_i32_0 = arith.constant 0 : i32
    %c0_i32_1 = arith.constant 0 : i32
    return %arg1, %c0_i32, %c0_i32_0 : i32, i32, i32
  }
  func.func @transform_13(%arg0: i32, %arg1: i32) -> (i32, i32, i32) {
    %c0_i32 = arith.constant 0 : i32
    %c0_i32_0 = arith.constant 0 : i32
    %c0_i32_1 = arith.constant 0 : i32
    return %arg1, %c0_i32, %c0_i32_0 : i32, i32, i32
  }
  func.func @transform_14(%arg0: i32, %arg1: i32) -> (i32, i32, i32) {
    %c0_i32 = arith.constant 0 : i32
    %c0_i32_0 = arith.constant 0 : i32
    %c0_i32_1 = arith.constant 0 : i32
    return %arg0, %c0_i32, %c0_i32_0 : i32, i32, i32
  }
}

</mosaic_0001>

<bundles_post_ra>
// kernel: transformer_forward.1
= control target key start
LH: loop header
LB: loop body
LE: loop exit
PB: predicated region body
PF: predicated region fallthrough
CT: control target
= control target key end

     0   :  { %s6396_s0 = inlined_call_operand.hbm [shape: f32[2,16,128], index: 0, kind: input, shape index: {}]   ;;  %s6397_s1 = inlined_call_operand.vmem [shape: f32[2,1,128], index: 1, kind: input, shape index: {}]   ;;  %s6398_s2 = inlined_call_operand.vmem [shape: f32[2,1,128], index: 2, kind: input, shape index: {}]   ;;  %s6399_s3 = inlined_call_operand.hbm [shape: f32[2,128,128], index: 3, kind: input, shape index: {}]   ;;  %s6400_s4 = inlined_call_operand.hbm [shape: f32[2,128,128], index: 4, kind: input, shape index: {}]   ;;  %s6401_s5 = inlined_call_operand.hbm [shape: f32[2,128,128], index: 5, kind: input, shape index: {}]   ;;  %s6402_s6 = inlined_call_operand.hbm [shape: f32[2,128,128], index: 6, kind: input, shape index: {}]   ;;  %s6403_s7 = inlined_call_operand.vmem [shape: f32[2,1,128], index: 7, kind: input, shape index: {}]   ;;  %s6404_s8 = inlined_call_operand.vmem [shape: f32[2,1,128], index: 8, kind: input, shape index: {}]   ;;  %s6405_s9 = inlined_call_operand.vmem [shape: f32[2,1,128], index: 9, kind: input, shape index: {}]   ;;  %s6406_s10 = inlined_call_operand.hbm [shape: f32[2,128,256], index: 10, kind: input, shape index: {}]   ;;  %s6407_s11 = inlined_call_operand.hbm [shape: f32[2,1,256], index: 11, kind: input, shape index: {}]   ;;  %s6408_s12 = inlined_call_operand.hbm [shape: f32[2,256,128], index: 12, kind: input, shape index: {}]   ;;  %s6409_s13 = inlined_call_operand.hbm [shape: f32[2,1,128], index: 13, kind: input, shape index: {}]   ;;  %s6410_s14 = inlined_call_operand.hbm [shape: f32[2,16,128], index: 14, kind: output, shape index: {}]  }
   0x1   :  { %6457 = sst [smem:[#allocation44_spill]] %s6396_s0 }
   0x2   :  { %6458 = sst [smem:[#allocation45_spill]] %s6397_s1 }
   0x3   :  { %6459 = sst [smem:[#allocation46_spill]] %s6398_s2 }
   0x4   :  { %6460 = sst [smem:[#allocation47_spill]] %s6399_s3 }
   0x5   :  { %6461 = sst [smem:[#allocation48_spill]] %s6400_s4 }
   0x6   :  { %6462 = sst [smem:[#allocation49_spill]] %s6401_s5 }
   0x7   :  { %6463 = sst [smem:[#allocation50_spill]] %s6402_s6 }
   0x8   :  { %6464 = sst [smem:[#allocation51_spill]] %s6403_s7 }
   0x9   :  { %6465 = sst [smem:[#allocation52_spill]] %s6404_s8 }
   0xa   :  { %6466 = sst [smem:[#allocation53_spill]] %s6405_s9 }
   0xb   :  { %6467 = sst [smem:[#allocation54_spill]] %s6406_s10 }
   0xc   :  { %6468 = sst [smem:[#allocation55_spill]] %s6407_s11 }
   0xd   :  { %6469 = sst [smem:[#allocation56_spill]] %s6408_s12 }
   0xe   :  { %6470 = sst [smem:[#allocation57_spill]] %s6409_s13 }
   0xf   :  { %6471 = sst [smem:[#allocation58_spill]] %s6410_s14 }
  0x10   :  { %19 = vsyncpa [#allocation4], 0 }
  0x11   :  { %21 = vsyncpa [#allocation4 + $0x1], 0 }
  0x12   :  { %22 = vsyncpa [#allocation7], 0 }
  0x13   :  { %24 = vsyncpa [#allocation7 + $0x1], 0 }
  0x14   :  { %25 = vsyncpa [#allocation10], 0 }
  0x15   :  { %27 = vsyncpa [#allocation10 + $0x1], 0 }
  0x16   :  { %28 = vsyncpa [#allocation13], 0 }
  0x17   :  { %30 = vsyncpa [#allocation13 + $0x1], 0 }
  0x18   :  { %31 = vsyncpa [#allocation16], 0 }
  0x19   :  { %33 = vsyncpa [#allocation16 + $0x1], 0 }
  0x1a   :  { %34 = vsyncpa [#allocation5], 0 }
  0x1b   :  { %36 = vsyncpa [#allocation5 + $0x1], 0  ;;  %s5260_s29 = smov 0   ;;  %s5262_s30 = smov 0  }
  0x1c   :  { %s5264_s15 = smov 0   ;;  %s5266_s16 = smov 0  }
  0x1d   :  { %s5268_s17 = smov 0   ;;  %s5270_s18 = smov 0  }
  0x1e   :  { %s5272_s19 = smov 0   ;;  %s5274_s20 = smov 0  }
  0x1f   :  { %s5276_s21 = smov 0   ;;  %s5278_s22 = smov 0  }
  0x20   :  { %s5280_s23 = smov 0  }
  0x21 LB: > { %6472 = sst [smem:[#allocation25_spill]] %s5125_s30  ;;  %p6416_p0 = scmp.eq.s32.totalorder %s5161_s23, 0  ;;  %s5161_s23 = sphi %s5280_s23, %s42_s23   ;;  %s5157_s22 = sphi %s5278_s22, %s6567_s22   ;;  %s5153_s21 = sphi %s5276_s21, %s6566_s21   ;;  %s5149_s20 = sphi %s5274_s20, %s6565_s20   ;;  %s5145_s19 = sphi %s5272_s19, %s6564_s19   ;;  %s5141_s18 = sphi %s5270_s18, %s6563_s18   ;;  %s5137_s17 = sphi %s5268_s17, %s6562_s17   ;;  %s5133_s16 = sphi %s5266_s16, %s6561_s16   ;;  %s5129_s15 = sphi %s5264_s15, %s6560_s15   ;;  %s5125_s30 = sphi %s5262_s30, %s6559_s30   ;;  %s5121_s29 = sphi %s5260_s29, %s6558_s29  }
  0x22   : > { %6473 = sst [smem:[#allocation26_spill]] %s5129_s15  ;;  %p146_p1 = scmp.ne.s32.totalorder %s5129_s15, %s5125_s30 }
  0x23   : > { %6474 = sst [smem:[#allocation27_spill]] %s5133_s16  ;;  %p6415_p3 = scmp.lt.s32.totalorder %s5161_s23, 4 }
  0x24   : > { %6475 = sst [smem:[#allocation28_spill]] %s5137_s17  ;;  %p148_p4 = por %p146_p1, %p6416_p0 }
  0x25   : > { %6476 = sst [smem:[#allocation29_spill]] %s5141_s18  ;;  %s5325_s25 = sand.u32 1, %s5161_s23  }
  0x26   : > { %6477 = sst [smem:[#allocation30_spill]] %s5145_s19  ;;  %s5328_s26 = sand.u32 1, %s5129_s15  }
  0x27   : > { %6478 = sst [smem:[#allocation31_spill]] %s5149_s20  ;;  %s5331_s27 = sshll.u32 %s5328_s26, 7 }
  0x28   : > { %6479 = sst [smem:[#allocation32_spill]] %s5153_s21  ;;  %s5334_s28 = sshll.u32 %s5153_s21, 11 }
  0x29   : > { %6480 = sst [smem:[#allocation33_spill]] %s5157_s22  ;;  %s6483_s3 = sld [smem:[#allocation47_spill]] }
  0x2a   : > { %6481 = sst [smem:[#allocation34_spill]] %s5161_s23  ;;  %s499_s9 = scalar_lea.vmem [#allocation6], %s5331_s27 }
  0x2b   : > { %6482 = sst [smem:[#allocation35_spill]] %s5331_s27  ;;  %s506_s8 = sshll.u32 %s499_s9, 4  ;;  %s5349_s8 = int_to_ptr.vmem [resolvable:$true] %s506_s8 }
  0x2c   : > { %p5345_p5 = pnand %p6415_p3, %p148_p4 }
  0x2e   : > { %s6484_s7 = scalar_select %p5345_p5, 1, 0 }
  0x2f   : > { %s5340_s24 = scalar_lea.hbm %s6483_s3, %s5334_s28  ;;  %p5358_p9 = pneg %p5345_p5 }
  0x30   : > { %s4753_s14 = scalar_lea.hbm %s5340_s24, 2048  ;;  %s4758_s19 = scalar_lea.hbm %s6483_s3, 4096 }
  0x31   : > { %p4754_p8 = scmp.ne.s32.totalorder %s5340_s24, %s4753_s14  ;;  %p4759_p12 = scmp.lt.u32.totalorder %s5340_s24, %s6483_s3 }
  0x32   : > { %p4760_p13 = scmp.lt.u32.totalorder %s4758_s19, %s4753_s14  ;;  %p4762_p4 = scmp.lt.u32.totalorder %s4753_s14, %s5340_s24 }
  0x33   : > { %p4756_p10 = pnand %p5358_p9, %p4754_p8 }
  0x34   : > { %p4761_p1 = por %p4760_p13, %p4759_p12 }
  0x35   : > { %p4757_p11 = pneg %p4756_p10 }
  0x36   : > { %p4763_p3 = por %p4762_p4, %p4761_p1 }
  0x38   : > { %p4764_p2 = pnand %p4763_p3, %p4757_p11 }
  0x3a   : > { %4767 = shalt.err (!%p4764_p2)
}
  0x3b   : > { %s4768_s2 = scalar_lea.vmem %s5349_s8, 2048  ;;  %s5163_s1 = smov [#allocation6]  }
  0x3c   : > { %p4769_p8 = scmp.ne.s32.totalorder %s5349_s8, %s4768_s2  ;;  %s4773_s9 = sshll.u32 %s5163_s1, 4  ;;  %s4774_s9 = int_to_ptr.vmem [resolvable:$false] %s4773_s9 }
  0x3d   : > { %s4775_s11 = scalar_lea.vmem %s4774_s9, 4096  ;;  %p4776_p6 = scmp.lt.s32.totalorder %s5349_s8, %s4774_s9 }
  0x3e   : > { %p4771_p10 = pnand %p4769_p8, %p5358_p9  ;;  %p4777_p7 = scmp.lt.s32.totalorder %s4775_s11, %s4768_s2 }
  0x40   : > { %p4772_p0 = pneg %p4771_p10  ;;  %p4778_p12 = por %p4777_p7, %p4776_p6 }
  0x42   : > { %p4779_p13 = pnand %p4778_p12, %p4772_p0 }
  0x44   : > { %4782 = shalt.err (!%p4779_p13)
}
  0x45   : > { %s6418_s13 = smov 128   ;;  %s6420_s19 = smov 8  }
  0x46   : > { %s6486_s2 = scalar_lea.sflag [#allocation7], %s5325_s25  ;;  %p6487_p0 = scmp.lt.s32.totalorder %s5161_s23, 5 }
  0x47   : > { %4560 = dma.hbm_to_vmem [thread:$0]  (!%p5345_p5), %s5340_s24, 2048, %s5349_s8, %s6486_s2, %s6418_s13, %s6418_s13, %s6420_s19  }
  0x48   : > { %p6488_p2 = scmp.ge.s32.totalorder %s5161_s23, 1  ;;  %s6491_s5 = sld [smem:[#allocation49_spill]] }
  0x49   : > { %s541_s3 = scalar_lea.vmem [#allocation9], %s5331_s27  ;;  %s3882_s8 = sshll.u32 %s5328_s26, 8 }
  0x4a   : > { %p5390_p3 = pnand %p6488_p2, %p6487_p0  ;;  %s548_s6 = sshll.u32 %s541_s3, 4  ;;  %s5401_s6 = int_to_ptr.vmem [resolvable:$true] %s548_s6 }
  0x4b   : > { %s6425_s24 = scalar_lea.sflag [#allocation10], %s5325_s25 }
  0x4c   : > { %s6489_s14 = scalar_select %p5390_p3, 1, 0 }
  0x4e   : > { %6490 = sst [smem:[#allocation36_spill]] %s6489_s14  ;;  %s5398_s11 = scalar_lea.hbm %s6491_s5, %s5334_s28 }
  0x4f   : > { %s4783_s2 = scalar_lea.hbm %s5398_s11, 2048  ;;  %s4788_s1 = scalar_lea.hbm %s6491_s5, 4096 }
  0x50   : > { %p4784_p6 = scmp.ne.s32.totalorder %s5398_s11, %s4783_s2  ;;  %p4789_p1 = scmp.lt.u32.totalorder %s5398_s11, %s6491_s5 }
  0x51   : > { %p4790_p4 = scmp.lt.u32.totalorder %s4788_s1, %s4783_s2  ;;  %p4792_p10 = scmp.lt.u32.totalorder %s4783_s2, %s5398_s11 }
  0x52   : > { %p4786_p7 = pnand %p4784_p6, %p5358_p9 }
  0x53   : > { %p4791_p8 = por %p4790_p4, %p4789_p1 }
  0x54   : > { %p4787_p11 = pneg %p4786_p7 }
  0x55   : > { %p4793_p12 = por %p4792_p10, %p4791_p8 }
  0x57   : > { %p4794_p13 = pnand %p4793_p12, %p4787_p11 }
  0x59   : > { %4797 = shalt.err (!%p4794_p13)
}
  0x5a   : > { %s4798_s3 = scalar_lea.vmem %s5401_s6, 2048  ;;  %s5166_s13 = smov [#allocation9]  }
  0x5b   : > { %p4799_p0 = scmp.ne.s32.totalorder %s5401_s6, %s4798_s3  ;;  %s4803_s19 = sshll.u32 %s5166_s13, 4  ;;  %s4804_s19 = int_to_ptr.vmem [resolvable:$false] %s4803_s19 }
  0x5c   : > { %s4805_s14 = scalar_lea.vmem %s4804_s19, 4096  ;;  %p4806_p7 = scmp.lt.s32.totalorder %s5401_s6, %s4804_s19 }
  0x5d   : > { %p4801_p2 = pnand %p4799_p0, %p5358_p9  ;;  %p4807_p3 = scmp.lt.s32.totalorder %s4805_s14, %s4798_s3 }
  0x5f   : > { %p4802_p6 = pneg %p4801_p2  ;;  %p4808_p1 = por %p4807_p3, %p4806_p7 }
  0x61   : > { %p4809_p4 = pnand %p4808_p1, %p4802_p6 }
  0x63   : > { %4812 = shalt.err (!%p4809_p4)
}
  0x64   : > { %s6492_s2 = smov 8   ;;  %s6493_s1 = smov 128  }
  0x65   : > { %4566 = dma.hbm_to_vmem [thread:$0]  (!%p5345_p5), %s5398_s11, 2048, %s5401_s6, %s6425_s24, %s6493_s1, %s6493_s1, %s6492_s2  }
  0x66   : > { %s3960_s9 = sshll.u32 %s5153_s21, 12  ;;  %s6494_s10 = sld [smem:[#allocation54_spill]] }
  0x67   : > { %s601_s14 = scalar_lea.vmem [#allocation12], %s3882_s8  ;;  %s6429_s4 = scalar_lea.sflag [#allocation13], %s5325_s25 }
  0x68   : > { %s608_s5 = sshll.u32 %s601_s14, 4  ;;  %s5441_s5 = int_to_ptr.vmem [resolvable:$true] %s608_s5 }
  0x6c   : > { %s5437_s19 = scalar_lea.hbm %s6494_s10, %s3960_s9  ;;  %s4818_s3 = scalar_lea.hbm %s6494_s10, 8192 }
  0x6d   : > { %s4813_s0 = scalar_lea.hbm %s5437_s19, 4096  ;;  %p4819_p10 = scmp.lt.u32.totalorder %s5437_s19, %s6494_s10 }
  0x6e   : > { %p4814_p3 = scmp.ne.s32.totalorder %s5437_s19, %s4813_s0  ;;  %p4820_p12 = scmp.lt.u32.totalorder %s4818_s3, %s4813_s0 }
  0x6f   : > { %p4822_p0 = scmp.lt.u32.totalorder %s4813_s0, %s5437_s19 }
  0x70   : > { %p4816_p11 = pnand %p4814_p3, %p5358_p9  ;;  %p4821_p13 = por %p4820_p12, %p4819_p10 }
  0x72   : > { %p4817_p8 = pneg %p4816_p11  ;;  %p4823_p2 = por %p4822_p0, %p4821_p13 }
  0x74   : > { %p4824_p6 = pnand %p4823_p2, %p4817_p8 }
  0x76   : > { %4827 = shalt.err (!%p4824_p6)
}
  0x77   : > { %s4828_s14 = scalar_lea.vmem %s5441_s5, 4096  ;;  %s5167_s6 = smov [#allocation12]  }
  0x78   : > { %p4829_p7 = scmp.ne.s32.totalorder %s5441_s5, %s4828_s14  ;;  %s4833_s11 = sshll.u32 %s5167_s6, 4  ;;  %s4834_s11 = int_to_ptr.vmem [resolvable:$false] %s4833_s11 }
  0x79   : > { %s4835_s24 = scalar_lea.vmem %s4834_s11, 8192  ;;  %p4836_p3 = scmp.lt.s32.totalorder %s5441_s5, %s4834_s11 }
  0x7a   : > { %p4831_p1 = pnand %p4829_p7, %p5358_p9  ;;  %p4837_p11 = scmp.lt.s32.totalorder %s4835_s24, %s4828_s14 }
  0x7c   : > { %p4832_p4 = pneg %p4831_p1  ;;  %p4838_p10 = por %p4837_p11, %p4836_p3 }
  0x7e   : > { %p4839_p12 = pnand %p4838_p10, %p4832_p4 }
  0x80   : > { %4842 = shalt.err (!%p4839_p12)
}
  0x81   : > { %s5168_s0 = smov 256   ;;  %s5169_s3 = smov 16  }
  0x82   : > { %4572 = dma.hbm_to_vmem [thread:$0]  (!%p5345_p5), %s5437_s19, 4096, %s5441_s5, %s6429_s4, %s5168_s0, %s5168_s0, %s5169_s3  }
  0x83   : > { %s6495_s12 = sld [smem:[#allocation56_spill]]  ;;  %s641_s11 = scalar_lea.vmem [#allocation15], %s3882_s8 }
  0x84   : > { %s648_s24 = sshll.u32 %s641_s11, 4  ;;  %s6428_s10 = scalar_lea.sflag [#allocation16], %s5325_s25  ;;  %s5476_s24 = int_to_ptr.vmem [resolvable:$true] %s648_s24 }
  0x89   : > { %s5472_s14 = scalar_lea.hbm %s6495_s12, %s3960_s9  ;;  %s4848_s9 = scalar_lea.hbm %s6495_s12, 8192 }
  0x8a   : > { %s4843_s27 = scalar_lea.hbm %s5472_s14, 4096  ;;  %p4849_p2 = scmp.lt.u32.totalorder %s5472_s14, %s6495_s12 }
  0x8b   : > { %p4844_p8 = scmp.ne.s32.totalorder %s5472_s14, %s4843_s27  ;;  %p4850_p6 = scmp.lt.u32.totalorder %s4848_s9, %s4843_s27 }
  0x8c   : > { %p4852_p1 = scmp.lt.u32.totalorder %s4843_s27, %s5472_s14 }
  0x8d   : > { %p4846_p13 = pnand %p4844_p8, %p5358_p9  ;;  %p4851_p7 = por %p4850_p6, %p4849_p2 }
  0x8f   : > { %p4847_p0 = pneg %p4846_p13  ;;  %p4853_p4 = por %p4852_p1, %p4851_p7 }
  0x91   : > { %p4854_p3 = pnand %p4853_p4, %p4847_p0 }
  0x93   : > { %4857 = shalt.err (!%p4854_p3)
}
  0x94   : > { %s4858_s8 = scalar_lea.vmem %s5476_s24, 4096  ;;  %s5170_s13 = smov [#allocation15]  }
  0x95   : > { %p4859_p11 = scmp.ne.s32.totalorder %s5476_s24, %s4858_s8  ;;  %s4863_s6 = sshll.u32 %s5170_s13, 4  ;;  %s4864_s6 = int_to_ptr.vmem [resolvable:$false] %s4863_s6 }
  0x96   : > { %s4865_s11 = scalar_lea.vmem %s4864_s6, 8192  ;;  %p4866_p8 = scmp.lt.s32.totalorder %s5476_s24, %s4864_s6 }
  0x97   : > { %p4861_p10 = pnand %p4859_p11, %p5358_p9  ;;  %p4867_p13 = scmp.lt.s32.totalorder %s4865_s11, %s4858_s8 }
  0x99   : > { %p4862_p12 = pneg %p4861_p10  ;;  %p4868_p2 = por %p4867_p13, %p4866_p8 }
  0x9b   : > { %p4869_p6 = pnand %p4868_p2, %p4862_p12 }
  0x9d   : > { %4872 = shalt.err (!%p4869_p6)
}
  0x9e   : > { %4578 = dma.hbm_to_vmem [thread:$0]  (!%p5345_p5), %s5472_s14, 4096, %s5476_s24, %s6428_s10, %s6493_s1, %s6493_s1, %s6492_s2  }
  0x9f   : > { %s5506_s27 = sadd.s32 4294967295, %s5161_s23   ;;  %s3864_s5 = sadd.s32 4294967294, %s5161_s23  }
  0xa0   : > { %s51_s19 = sadd.s32 1, %s5153_s21  ;;  %s54_s9 = sadd.s32 1, %s5157_s22 }
  0xa1   : > { %p52_p0 = scmp.ge.s32.totalorder %s51_s19, 2  ;;  %s61_s0 = sadd.s32 1, %s5141_s18 }
  0xa2   : > { %p68_p7 = scmp.ne.s32.totalorder %s5141_s18, %s5137_s17  ;;  %p74_p1 = scmp.ne.s32.totalorder %s5137_s17, %s5133_s16 }
  0xa3   : > { %s6569_s19 = smov (%p52_p0, %s51_s19), 0  ;;  %s6571_s9 = smov (!%p52_p0, %s54_s9), %s5157_s22 }
  0xa4   : > { %6496 = sst [smem:[#allocation37_spill]] %s6569_s19  ;;  %p6497_p4 = scmp.eq.s32.totalorder %s5161_s23, 0 }
  0xa5   : > { %p75_p11 = scmp.eq.s32.totalorder %s5506_s27, 0  ;;  %p56_p10 = scmp.ge.s32.totalorder %s6571_s9, 2 }
  0xa6   : > { %p5524_p3 = por %p6497_p4, %p68_p7  ;;  %s136_s24 = ssub.s32 %s5153_s21, %s6569_s19 }
  0xa7   : > { %p5534_p12 = por %p75_p11, %p74_p1  ;;  %p137_p8 = scmp.eq.s32.totalorder %s136_s24, 0 }
  0xa8   : > { %s6573_s9 = smov (%p56_p10, %s6571_s9), 0  ;;  %s6501_s8 = sadd.s32 1, %s5129_s15 }
  0xa9   : > { %s6499_s3 = scalar_select %p5534_p12, 1, 0 }
  0xaa   : > { %6500 = sst [smem:[#allocation38_spill]] %s6573_s9  ;;  %s58_s6 = ssub.s32 %s5157_s22, %s6573_s9 }
  0xab   : > { %s5543_s13 = scalar_select %p137_p8, %s5129_s15, %s6501_s8  }
  0xac   : > { %p6503_p13 = scmp.ne.s32.totalorder %s5125_s30, %s5121_s29  ;;  %s6505_s10 = sld [smem:[#allocation35_spill]] }
  0xad   : > { %6502 = sst [smem:[#allocation39_spill]] %s5543_s13  ;;  %p59_p6 = scmp.eq.s32.totalorder %s58_s6, 0 }
  0xae   : > { %p5550_p2 = por %p6503_p13, %p75_p11  ;;  %p436_p0 = scmp.eq.s32.totalorder %s5506_s27, 3 }
  0xaf   : > { %p442_p4 = scmp.eq.s32.totalorder %s3864_s5, 3  ;;  %s462_s24 = sand.u32 1, %s5141_s18  }
  0xb0   : > { %s6504_s11 = scalar_select %p5550_p2, 1, 0 }
  0xb1   : > { %s5557_s4 = scalar_select %p59_p6, %s5141_s18, %s61_s0  }
  0xb2   : > { %p5562_p10 = por %p436_p0, %p68_p7  ;;  %p5569_p8 = por %p442_p4, %p74_p1 }
  0xb3   : > { %6506 = sst [smem:[#allocation40_spill]] %s5557_s4  ;;  %s3867_s12 = sshll.u32 %s462_s24, 4 }
  0xb4   : > { %s6507_s8 = scalar_select %p5562_p10, 1, 0 }
  0xb5   : > { %s6509_s29 = scalar_select %p5569_p8, 1, 0 }
  0xb6   : > { %6508 = sst [smem:[#allocation35_spill]] %s6507_s8  ;;  %s3955_s9 = sshll.u32 %s5157_s22, 8 }
  0xb7   : > { %6510 = sst [smem:[#allocation41_spill]] %s6509_s29  ;;  %s6511_s6 = sld [smem:[#allocation44_spill]] }
  0xb8   : > { %s466_s5 = scalar_lea.vmem [#allocation3], %s3867_s12  ;;  %p6512_p7 = scmp.lt.s32.totalorder %s5161_s23, 4 }
  0xb9   : > { %s473_s0 = sshll.u32 %s466_s5, 4  ;;  %s6514_s29 = sld [smem:[#allocation48_spill]]  ;;  %s5579_s0 = int_to_ptr.vmem [resolvable:$true] %s473_s0 }
  0xba   : > { %p5585_p1 = pnand %p6512_p7, %p5524_p3  ;;  %s5598_s12 = scalar_lea.sflag [#allocation4], %s462_s24 }
  0xbc   : > { %p4875_p13 = pneg %p5585_p1 }
  0xbd   : > { %s5577_s15 = scalar_lea.hbm %s6511_s6, %s3955_s9  ;;  %s520_s9 = scalar_lea.vmem [#allocation8], %s6505_s10 }
  0xbe   : > { %s5596_s13 = sshll.u32 %s520_s9, 4  ;;  %s4873_s5 = scalar_lea.hbm %s5577_s15, 256  ;;  %s5630_s13 = int_to_ptr.vmem [resolvable:$true] %s5596_s13 }
  0xbf   : > { %s6515_s8 = smov %s6514_s29  ;;  %s5593_s19 = scalar_lea.hbm %s6514_s29, %s5334_s28 }
  0xc0   : > { %p4874_p11 = scmp.ne.s32.totalorder %s5577_s15, %s4873_s5  ;;  %s4878_s18 = scalar_lea.hbm %s6511_s6, 512 }
  0xc1   : > { %p4879_p0 = scmp.lt.u32.totalorder %s5577_s15, %s6511_s6  ;;  %p4880_p4 = scmp.lt.u32.totalorder %s4878_s18, %s4873_s5 }
  0xc2   : > { %p4876_p3 = pnand %p4875_p13, %p4874_p11  ;;  %p4882_p8 = scmp.lt.u32.totalorder %s4873_s5, %s5577_s15 }
  0xc3   : > { %p4881_p7 = por %p4880_p4, %p4879_p0 }
  0xc4   : > { %p4877_p6 = pneg %p4876_p3 }
  0xc5   : > { %p4883_p10 = por %p4882_p8, %p4881_p7 }
  0xc7   : > { %p4884_p2 = pnand %p4883_p10, %p4877_p6 }
  0xc9   : > { %4887 = shalt.err (!%p4884_p2)
}
  0xca   : > { %s4888_s24 = scalar_lea.vmem %s5579_s0, 256  ;;  %s5171_s16 = smov [#allocation3]  }
  0xcb   : > { %p4889_p11 = scmp.ne.s32.totalorder %s5579_s0, %s4888_s24  ;;  %s4893_s9 = sshll.u32 %s5171_s16, 4  ;;  %s4894_s9 = int_to_ptr.vmem [resolvable:$false] %s4893_s9 }
  0xcc   : > { %s4895_s14 = scalar_lea.vmem %s4894_s9, 512  ;;  %p4896_p5 = scmp.lt.s32.totalorder %s5579_s0, %s4894_s9 }
  0xcd   : > { %p4891_p3 = pnand %p4889_p11, %p4875_p13  ;;  %p4897_p0 = scmp.lt.s32.totalorder %s4895_s14, %s4888_s24 }
  0xcf   : > { %p4892_p12 = pneg %p4891_p3  ;;  %p4898_p4 = por %p4897_p0, %p4896_p5 }
  0xd1   : > { %p4899_p8 = pnand %p4898_p4, %p4892_p12 }
  0xd3   : > { %4902 = shalt.err (!%p4899_p8)
}
  0xd4   : > { %4557 = dma.hbm_to_vmem [thread:$0]  (!%p5585_p1), %s5577_s15, 256, %s5579_s0, %s5598_s12, %s6493_s1, %s6493_s1, %s6492_s2  }
  0xd5   : > { %s4903_s5 = scalar_lea.hbm %s5593_s19, 2048  ;;  %s4908_s22 = scalar_lea.hbm %s6515_s8, 4096 }
  0xd6   : > { %p4904_p5 = scmp.ne.s32.totalorder %s5593_s19, %s4903_s5  ;;  %p4909_p10 = scmp.lt.u32.totalorder %s5593_s19, %s6515_s8 }
  0xd7   : > { %p4910_p13 = scmp.lt.u32.totalorder %s4908_s22, %s4903_s5  ;;  %p4912_p7 = scmp.lt.u32.totalorder %s4903_s5, %s5593_s19 }
  0xd8   : > { %p4906_p12 = pnand %p4904_p5, %p5358_p9 }
  0xd9   : > { %p4911_p6 = por %p4910_p13, %p4909_p10 }
  0xda   : > { %p4907_p2 = pneg %p4906_p12 }
  0xdb   : > { %p4913_p11 = por %p4912_p7, %p4911_p6 }
  0xdd   : > { %p4914_p1 = pnand %p4913_p11, %p4907_p2 }
  0xdf   : > { %4917 = shalt.err (!%p4914_p1)
}
  0xe0   : > { %s4918_s15 = scalar_lea.vmem %s5630_s13, 2048  ;;  %s5172_s0 = smov [#allocation8]  }
  0xe1   : > { %p4919_p3 = scmp.ne.s32.totalorder %s5630_s13, %s4918_s15  ;;  %s4923_s12 = sshll.u32 %s5172_s0, 4  ;;  %s4924_s12 = int_to_ptr.vmem [resolvable:$false] %s4923_s12 }
  0xe2   : > { %s4925_s16 = scalar_lea.vmem %s4924_s12, 4096  ;;  %p4926_p8 = scmp.lt.s32.totalorder %s5630_s13, %s4924_s12 }
  0xe3   : > { %p4921_p0 = pnand %p4919_p3, %p5358_p9  ;;  %p4927_p5 = scmp.lt.s32.totalorder %s4925_s16, %s4918_s15 }
  0xe5   : > { %p4922_p4 = pneg %p4921_p0  ;;  %p4928_p12 = por %p4927_p5, %p4926_p8 }
  0xe7   : > { %p4929_p10 = pnand %p4928_p12, %p4922_p4 }
  0xe9   : > { %4932 = shalt.err (!%p4929_p10)
}
  0xea   : > { %p6516_p2 = scmp.ne.s32.totalorder %s6484_s7, 0  ;;  %s6517_s9 = scalar_lea.sflag [#allocation7], %s5325_s25 }
  0xeb   : > { %s6518_s4 = sld [smem:[#allocation50_spill]]  ;;  %s562_s22 = scalar_lea.vmem [#allocation11], %s6505_s10 }
  0xec   : > { %4563 = dma.hbm_to_vmem [thread:$0]  (!%p6516_p2), %s5593_s19, 2048, %s5630_s13, %s6517_s9, %s6493_s1, %s6493_s1, %s6492_s2  }
  0xed   : > { %s569_s29 = sshll.u32 %s562_s22, 4  ;;  %s3885_s24 = sshll.u32 %s5328_s26, 1  ;;  %s5665_s29 = int_to_ptr.vmem [resolvable:$true] %s569_s29 }
  0xf1   : > { %s5662_s18 = scalar_lea.hbm %s6518_s4, %s5334_s28  ;;  %s4938_s0 = scalar_lea.hbm %s6518_s4, 4096 }
  0xf2   : > { %s4933_s15 = scalar_lea.hbm %s5662_s18, 2048  ;;  %p4939_p11 = scmp.lt.u32.totalorder %s5662_s18, %s6518_s4 }
  0xf3   : > { %p4934_p13 = scmp.ne.s32.totalorder %s5662_s18, %s4933_s15  ;;  %p4940_p1 = scmp.lt.u32.totalorder %s4938_s0, %s4933_s15 }
  0xf4   : > { %p4942_p0 = scmp.lt.u32.totalorder %s4933_s15, %s5662_s18 }
  0xf5   : > { %p4936_p6 = pnand %p4934_p13, %p5358_p9  ;;  %p4941_p3 = por %p4940_p1, %p4939_p11 }
  0xf7   : > { %p4937_p7 = pneg %p4936_p6  ;;  %p4943_p4 = por %p4942_p0, %p4941_p3 }
  0xf9   : > { %p4944_p8 = pnand %p4943_p4, %p4937_p7 }
  0xfb   : > { %4947 = shalt.err (!%p4944_p8)
}
  0xfc   : > { %s4948_s10 = scalar_lea.vmem %s5665_s29, 2048  ;;  %s5173_s16 = smov [#allocation11]  }
  0xfd   : > { %p4949_p5 = scmp.ne.s32.totalorder %s5665_s29, %s4948_s10  ;;  %s4953_s9 = sshll.u32 %s5173_s16, 4  ;;  %s4954_s9 = int_to_ptr.vmem [resolvable:$false] %s4953_s9 }
  0xfe   : > { %s4955_s14 = scalar_lea.vmem %s4954_s9, 4096  ;;  %p4956_p13 = scmp.lt.s32.totalorder %s5665_s29, %s4954_s9 }
  0xff   : > { %p4951_p12 = pnand %p4949_p5, %p5358_p9  ;;  %p4957_p6 = scmp.lt.s32.totalorder %s4955_s14, %s4948_s10 }
 0x101   : > { %p4952_p10 = pneg %p4951_p12  ;;  %p4958_p11 = por %p4957_p6, %p4956_p13 }
 0x103   : > { %p4959_p1 = pnand %p4958_p11, %p4952_p10 }
 0x105   : > { %4962 = shalt.err (!%p4959_p1)
}
 0x106   : > { %s6519_s5 = scalar_lea.sflag [#allocation10], %s5325_s25  ;;  %s3961_s22 = sshll.u32 %s5153_s21, 5 }
 0x107   : > { %4569 = dma.hbm_to_vmem [thread:$0]  (!%p6516_p2), %s5662_s18, 2048, %s5665_s29, %s6519_s5, %s6493_s1, %s6493_s1, %s6492_s2  }
 0x108   : > { %s6520_s13 = sld [smem:[#allocation55_spill]]  ;;  %s622_s28 = scalar_lea.vmem [#allocation14], %s3885_s24 }
 0x109   : > { %s630_s12 = sshll.u32 %s622_s28, 4  ;;  %s631_s12 = int_to_ptr.vmem [resolvable:$true] %s630_s12 }
 0x10e   : > { %s5698_s0 = scalar_lea.hbm %s6520_s13, %s3961_s22  ;;  %s4968_s18 = scalar_lea.hbm %s6520_s13, 64 }
 0x10f   : > { %s4963_s10 = scalar_lea.hbm %s5698_s0, 32  ;;  %p4969_p4 = scmp.lt.u32.totalorder %s5698_s0, %s6520_s13 }
 0x110   : > { %p4964_p7 = scmp.ne.s32.totalorder %s5698_s0, %s4963_s10  ;;  %p4970_p8 = scmp.lt.u32.totalorder %s4968_s18, %s4963_s10 }
 0x111   : > { %p4972_p12 = scmp.lt.u32.totalorder %s4963_s10, %s5698_s0 }
 0x112   : > { %p4966_p3 = pnand %p4964_p7, %p5358_p9  ;;  %p4971_p5 = por %p4970_p8, %p4969_p4 }
 0x114   : > { %p4967_p0 = pneg %p4966_p3  ;;  %p4973_p10 = por %p4972_p12, %p4971_p5 }
 0x116   : > { %p4974_p13 = pnand %p4973_p10, %p4967_p0 }
 0x118   : > { %4977 = shalt.err (!%p4974_p13)
}
 0x119   : > { %s4978_s24 = scalar_lea.vmem %s631_s12, 32  ;;  %s5174_s9 = smov [#allocation14]  }
 0x11a   : > { %p4979_p6 = scmp.ne.s32.totalorder %s631_s12, %s4978_s24  ;;  %s4983_s14 = sshll.u32 %s5174_s9, 4  ;;  %s4984_s14 = int_to_ptr.vmem [resolvable:$false] %s4983_s14 }
 0x11b   : > { %s4985_s5 = scalar_lea.vmem %s4984_s14, 64  ;;  %p4986_p7 = scmp.lt.s32.totalorder %s631_s12, %s4984_s14 }
 0x11c   : > { %p4981_p11 = pnand %p4979_p6, %p5358_p9  ;;  %p4987_p3 = scmp.lt.s32.totalorder %s4985_s5, %s4978_s24 }
 0x11e   : > { %p4982_p1 = pneg %p4981_p11  ;;  %p4988_p2 = por %p4987_p3, %p4986_p7 }
 0x120   : > { %p4989_p4 = pnand %p4988_p2, %p4982_p1 }
 0x122   : > { %4992 = shalt.err (!%p4989_p4)
}
 0x123   : > { %p6521_p8 = scmp.ne.s32.totalorder %s6484_s7, 0  ;;  %s6522_s22 = scalar_lea.sflag [#allocation13], %s5325_s25 }
 0x124   : > { %s3891_s15 = sshll.u32 %s5153_s21, 4  ;;  %s661_s19 = scalar_lea.vmem [#allocation17], %s5328_s26 }
 0x125   : > { %4575 = dma.hbm_to_vmem [thread:$0]  (!%p6521_p8), %s5698_s0, 32, %s631_s12, %s6522_s22  }
 0x126   : > { %s668_s28 = sshll.u32 %s661_s19, 4  ;;  %s6523_s1 = sld [smem:[#allocation57_spill]]  ;;  %s669_s28 = int_to_ptr.vmem [resolvable:$true] %s668_s28 }
 0x12c   : > { %s666_s18 = scalar_lea.hbm %s6523_s1, %s3891_s15  ;;  %s4998_s9 = scalar_lea.hbm %s6523_s1, 32 }
 0x12d   : > { %s4993_s29 = scalar_lea.hbm %s666_s18, 16  ;;  %p4999_p12 = scmp.lt.u32.totalorder %s666_s18, %s6523_s1 }
 0x12e   : > { %p4994_p2 = scmp.ne.s32.totalorder %s666_s18, %s4993_s29  ;;  %p5000_p10 = scmp.lt.u32.totalorder %s4998_s9, %s4993_s29 }
 0x12f   : > { %p5002_p6 = scmp.lt.u32.totalorder %s4993_s29, %s666_s18 }
 0x130   : > { %p4996_p0 = pnand %p4994_p2, %p5358_p9  ;;  %p5001_p13 = por %p5000_p10, %p4999_p12 }
 0x132   : > { %p4997_p5 = pneg %p4996_p0  ;;  %p5003_p11 = por %p5002_p6, %p5001_p13 }
 0x134   : > { %p5004_p1 = pnand %p5003_p11, %p4997_p5 }
 0x136   : > { %5007 = shalt.err (!%p5004_p1)
}
 0x137   : > { %s5008_s26 = scalar_lea.vmem %s669_s28, 16  ;;  %s5175_s0 = smov [#allocation17]  }
 0x138   : > { %p5009_p7 = scmp.ne.s32.totalorder %s669_s28, %s5008_s26  ;;  %s5013_s12 = sshll.u32 %s5175_s0, 4  ;;  %s5014_s12 = int_to_ptr.vmem [resolvable:$false] %s5013_s12 }
 0x139   : > { %s5015_s22 = scalar_lea.vmem %s5014_s12, 32  ;;  %p5016_p2 = scmp.lt.s32.totalorder %s669_s28, %s5014_s12 }
 0x13a   : > { %p5011_p3 = pnand %p5009_p7, %p5358_p9  ;;  %p5017_p0 = scmp.lt.s32.totalorder %s5015_s22, %s5008_s26 }
 0x13c   : > { %p5012_p4 = pneg %p5011_p3  ;;  %p5018_p8 = por %p5017_p0, %p5016_p2 }
 0x13e   : > { %p5019_p10 = pnand %p5018_p8, %p5012_p4 }
 0x140   : > { %5022 = shalt.err (!%p5019_p10)
}
 0x141   : > { %p6524_p12 = scmp.ne.s32.totalorder %s6484_s7, 0  ;;  %s6525_s15 = scalar_lea.sflag [#allocation16], %s5325_s25 }
 0x142   : > { %s6526_s19 = sld [smem:[#allocation36_spill]] }
 0x143   : > { %4581 = dma.hbm_to_vmem [thread:$0]  (!%p6524_p12), %s666_s18, 16, %s669_s28, %s6525_s15  }
 0x148   : > { %p6527_p5 = scmp.ne.s32.totalorder %s6526_s19, 0 }
 0x14a   : > { %677 = sbr.rel (%p6527_p5) target bundleno = 2988 (0xbac), region = 76 }
 0x151   : > { %s5743_s20 = sand.u32 1, %s5137_s17   ;;  %p6528_p9 = scmp.ne.s32.totalorder %s6499_s3, 0 }
 0x152   : > { %s6445_s10 = sshll.u32 %s5743_s20, 4  ;;  %s680_s2 = scalar_lea.sflag [#allocation4], %s5743_s20 }
 0x153   : > { %s5749_s29 = scalar_lea.vmem [#allocation3], %s6445_s10 }
 0x154   : > { %5096 = dma.done.wait (%p6528_p9), %s680_s2, 256  }
 0x155   : > { %5098 = vsyncadd (%p6528_p9), %s680_s2, 4294967040  ;;  %s688_s7 = sand.u32 1, %s5506_s27   ;;  %s5757_s25 = sand.u32 1, %s5125_s30  }
 0x156   : > { %s3894_s28 = sshll.u32 %s5757_s25, 7  ;;  %s689_s18 = scalar_lea.sflag [#allocation7], %s688_s7 }
 0x157   : > { %s5760_s16 = scalar_lea.vmem [#allocation6], %s3894_s28  ;;  %p6529_p8 = scmp.ne.s32.totalorder %s6504_s11, 0 }
 0x159   : > { %5100 = dma.done.wait (%p6529_p8), %s689_s18, 4096  }
 0x15a   : > { %5102 = vsyncadd (%p6529_p8), %s689_s18, 4294963200  ;;  %s5766_s24 = scalar_lea.vmem [#allocation8], %s3894_s28  ;;  %s707_s3 = scalar_lea.sflag [#allocation10], %s688_s7 }
 0x15b   : > { %s5768_s9 = scalar_lea.vmem [#allocation9], %s3894_s28 }
 0x15c   : > { %5104 = dma.done.wait (%p6529_p8), %s707_s3, 4096  }
 0x15d   : > { %5106 = vsyncadd (%p6529_p8), %s707_s3, 4294963200  ;;  %s3898_s27 = sshll.u32 %s5757_s25, 8  ;;  %s5775_s14 = scalar_lea.vmem [#allocation11], %s3894_s28 }
 0x15e   : > { %s725_s5 = scalar_lea.sflag [#allocation13], %s688_s7  ;;  %s5777_s26 = scalar_lea.vmem [#allocation12], %s3898_s27 }
 0x15f   : > { %5108 = dma.done.wait (%p6529_p8), %s725_s5, 4128  }
 0x160   : > { %5110 = vsyncadd (%p6529_p8), %s725_s5, 4294963168  ;;  %s3899_s0 = sshll.u32 %s5757_s25, 1  ;;  %s743_s22 = scalar_lea.sflag [#allocation16], %s688_s7 }
 0x161   : > { %s5784_s12 = scalar_lea.vmem [#allocation14], %s3899_s0  ;;  %s5786_s15 = scalar_lea.vmem [#allocation15], %s3898_s27 }
 0x162   : > { %6530 = sst [smem:[#allocation42_spill]] %s5784_s12 }
 0x163   : > { %6531 = sst [smem:[#allocation43_spill]] %s5786_s15 }
 0x164   : > { %5112 = dma.done.wait (%p6529_p8), %s743_s22, 4112  }
 0x165   : > { %5114 = vsyncadd (%p6529_p8), %s743_s22, 4294963184  ;;  %s6532_s19 = sld [smem:[#allocation30_spill]]  ;;  %s6533_s3 = sld [smem:[#allocation45_spill]] }
 0x166   : > { %s6534_s11 = sld [smem:[#allocation46_spill]]  ;;  %s6535_s1 = sld [smem:[#allocation51_spill]] }
 0x167   : > { %s6536_s13 = sld [smem:[#allocation52_spill]]  ;;  %s6537_s28 = sld [smem:[#allocation53_spill]] }
 0x168   : > { %s754_s23 = scalar_lea.vmem [#allocation17], %s5757_s25  ;;  %s6538_s12 = sshll.u32 %s5743_s20, 4 }
 0x169   : > { %s5819_s15 = scalar_lea.vmem [#allocation18], %s6538_s12 }
 0x16b   : > { %p853_p13 = scmp.lt.s32.totalorder %s6532_s19, 1  ;;  %p3902_p6 = scmp.ne.s32.totalorder %s6532_s19, 0 }
 0x16c   : > { %v872_v0 = vld [vmem:[%s5749_s29] sm:$0xff] (!%p3902_p6)  ;;  %v873_v1 = vld [vmem:[%s5749_s29 + $0x8] sm:$0xff] (!%p3902_p6) }
 0x16d   : > { %s5794_s2 = scalar_select %p853_p13, %s6532_s19, 1 }
 0x16e   : > { %871 = sbr.rel (%p3902_p6) target bundleno = 373 (0x175), region = 116  ;;  %874 = vst [vmem:[#allocation2] sm:$0xff] (!%p3902_p6), %v872_v0  ;;  %875 = vst [vmem:[#allocation2 + $0x8] sm:$0xff] (!%p3902_p6), %v873_v1 }
 0x16f   : > { %s855_s7 = scalar_lea.vmem %s6533_s3, %s5794_s2  ;;  %s858_s0 = scalar_lea.vmem %s6534_s11, %s5794_s2 }
 0x170   : > { %s861_s4 = scalar_lea.vmem %s6535_s1, %s5794_s2  ;;  %s864_s21 = scalar_lea.vmem %s6536_s13, %s5794_s2 }
 0x171   : > { %s867_s18 = scalar_lea.vmem %s6537_s28, %s5794_s2 }
 0x175 PF: > { %v876_v2 = vld [vmem:[#allocation2] sm:$0xff]  ;;  %v877_v3 = vld [vmem:[#allocation2 + $0x8] sm:$0xff]  ;;  %v919_v4 = vld [vmem:[%s5760_s16] sm:$0xff]  ;;  %s5176_s10 = smov 96   ;;  %s5177_s29 = smov 64   ;;  %vm2068_vm0 = vcmask 261120  }
 0x176   : > { %880 = vadd.xlane.f32.xlu0 %v876_v2  ;;  %v920_v5 = vld [vmem:[%s5760_s16 + $0x8] sm:$0xff]  ;;  %v1302_v6 = vld [vmem:[%s5766_s24] sm:$0xff]  ;;  %v921_v9 = vld [vmem:[%s5760_s16 + $0x10] sm:$0xff]  ;;  %vm2425_vm2 = vcmask 130048   ;;  %vm3136_vm3 = vcmask 523264   ;;  %vm3139_vm4 = vcmask 785408  }
 0x177   : > { %v4302_v7 = vpack.c.bf16 %v920_v5, %v919_v4  ;;  %v1303_v8 = vld [vmem:[%s5766_s24 + $0x8] sm:$0xff]  ;;  %v922_v10 = vld [vmem:[%s5760_s16 + $0x18] sm:$0xff]  ;;  %v1304_v13 = vld [vmem:[%s5766_s24 + $0x10] sm:$0xff]  ;;  %s6548_s2 = sld [smem:[#allocation30_spill]] }
 0x178   : > { %v4334_v11 = vpack.c.bf16 %v1303_v8, %v1302_v6  ;;  %v4306_v12 = vpack.c.bf16 %v922_v10, %v921_v9  ;;  %v1305_v14 = vld [vmem:[%s5766_s24 + $0x18] sm:$0xff]  ;;  %v923_v24 = vld [vmem:[%s5760_s16 + $0x20] sm:$0xff]  ;;  %v924_v25 = vld [vmem:[%s5760_s16 + $0x28] sm:$0xff] }
 0x179   : > { %4303 = vmatprep.subr.bf16.mxu0 %v4302_v7  ;;  %v4338_v15 = vpack.c.bf16 %v1305_v14, %v1304_v13  ;;  %v4310_v26 = vpack.c.bf16 %v924_v25, %v923_v24  ;;  %v1306_v27 = vld [vmem:[%s5766_s24 + $0x20] sm:$0xff]  ;;  %v1307_v28 = vld [vmem:[%s5766_s24 + $0x28] sm:$0xff]  ;;  %v925_v30 = vld [vmem:[%s5760_s16 + $0x30] sm:$0xff] }
 0x17a   : > { %882 = vadd.xlane.f32.xlu0 %v877_v3  ;;  %4305 = vmatpush3.bf16.msra.mxu0 %v4302_v7  ;;  %v4342_v29 = vpack.c.bf16 %v1307_v28, %v1306_v27  ;;  %v926_v31 = vld [vmem:[%s5760_s16 + $0x38] sm:$0xff]  ;;  %v1308_v33 = vld [vmem:[%s5766_s24 + $0x30] sm:$0xff]  ;;  %v927_v36 = vld [vmem:[%s5760_s16 + $0x40] sm:$0xff] }
 0x17b   : > { %4335 = vmatprep.subr.bf16.mxu1 %v4334_v11  ;;  %4307 = vmatprep.subr.bf16.mxu0 %v4306_v12  ;;  %v4314_v32 = vpack.c.bf16 %v926_v31, %v925_v30  ;;  %v1309_v34 = vld [vmem:[%s5766_s24 + $0x38] sm:$0xff]  ;;  %v928_v37 = vld [vmem:[%s5760_s16 + $0x48] sm:$0xff]  ;;  %v1310_v39 = vld [vmem:[%s5766_s24 + $0x40] sm:$0xff] }
 0x17c   : > { %4337 = vmatpush3.bf16.msra.mxu1 %v4334_v11  ;;  %v4346_v35 = vpack.c.bf16 %v1309_v34, %v1308_v33  ;;  %v4318_v38 = vpack.c.bf16 %v928_v37, %v927_v36  ;;  %v1311_v40 = vld [vmem:[%s5766_s24 + $0x48] sm:$0xff]  ;;  %v929_v42 = vld [vmem:[%s5760_s16 + $0x50] sm:$0xff]  ;;  %v930_v43 = vld [vmem:[%s5760_s16 + $0x58] sm:$0xff] }
 0x17d   : > { %4339 = vmatprep.subr.bf16.mxu1 %v4338_v15  ;;  %v4350_v41 = vpack.c.bf16 %v1311_v40, %v1310_v39  ;;  %v1312_v44 = vld [vmem:[%s5766_s24 + $0x50] sm:$0xff]  ;;  %v4322_v45 = vpack.c.bf16 %v930_v43, %v929_v42  ;;  %v1313_v46 = vld [vmem:[%s5766_s24 + $0x58] sm:$0xff]  ;;  %v931_v47 = vld [vmem:[%s5760_s16 + $0x60] sm:$0xff]  ;;  %v5179_v42 = vmov 1983009808   ;;  %p3949_p11 = scmp.ne.s32.totalorder %s6548_s2, 1 }
 0x17e   : > { %4309 = vmatpush3.bf16.msra.mxu0 %v4306_v12  ;;  %v932_v48 = vld [vmem:[%s5760_s16 + $0x68] sm:$0xff]  ;;  %v4354_v49 = vpack.c.bf16 %v1313_v46, %v1312_v44  ;;  %v1314_v51 = vld [vmem:[%s5766_s24 + $0x60] sm:$0xff]  ;;  %v933_v54 = vld [vmem:[%s5760_s16 + $0x70] sm:$0xff]  ;;  %v1033_v43 = vunpack.c.l.s4 %v5179_v42  ;;  %v1035_v44 = vlaneseq }
 0x17f   : > { %4311 = vmatprep.subr.bf16.mxu0 %v4310_v26  ;;  %v4326_v50 = vpack.c.bf16 %v932_v48, %v931_v47  ;;  %v1315_v52 = vld [vmem:[%s5766_s24 + $0x68] sm:$0xff]  ;;  %v934_v55 = vld [vmem:[%s5760_s16 + $0x78] sm:$0xff]  ;;  %v1316_v57 = vld [vmem:[%s5766_s24 + $0x70] sm:$0xff]  ;;  %s5178_s16 = smov 32   ;;  %v5180_v47 = vmov 1934713408  }
 0x180   : > { %4341 = vmatpush3.bf16.msra.mxu1 %v4338_v15  ;;  %v4358_v53 = vpack.c.bf16 %v1315_v52, %v1314_v51  ;;  %v4330_v56 = vpack.c.bf16 %v934_v55, %v933_v54  ;;  %v1317_v58 = vld [vmem:[%s5766_s24 + $0x78] sm:$0xff]  ;;  %v1685_v60 = vld [vmem:[%s5768_s9] sm:$0xff]  ;;  %v1686_v61 = vld [vmem:[%s5768_s9 + $0x8] sm:$0xff]  ;;  %v1065_v48 = vunpack.c.l.s4 %v5180_v47 }
 0x181   : > { %4343 = vmatprep.subr.bf16.mxu1 %v4342_v29  ;;  %v4362_v59 = vpack.c.bf16 %v1317_v58, %v1316_v57  ;;  %v4366_v62 = vpack.c.bf16 %v1686_v61, %v1685_v60  ;;  %v3903_v6 = vld [vmem:[%s855_s7] ss:$0 sm:$0xff]  ;;  %v1688_v14 = vld [vmem:[%s5768_s9 + $0x18] sm:$0xff]  ;;  %v1693_v24 = vld [vmem:[%s5768_s9 + $0x40] sm:$0xff] }
 0x182   : > { %4313 = vmatpush3.bf16.msra.mxu0 %v4310_v26  ;;  %v3904_v8 = vld [vmem:[%s858_s0] ss:$0 sm:$0xff]  ;;  %v1694_v25 = vld [vmem:[%s5768_s9 + $0x48] sm:$0xff]  ;;  %v1696_v28 = vld [vmem:[%s5768_s9 + $0x58] sm:$0xff] }
 0x183   : > { %4315 = vmatprep.subr.bf16.mxu0 %v4314_v32  ;;  %v1687_v13 = vld [vmem:[%s5768_s9 + $0x10] sm:$0xff]  ;;  %v4382_v26 = vpack.c.bf16 %v1694_v25, %v1693_v24  ;;  %v1697_v30 = vld [vmem:[%s5768_s9 + $0x60] sm:$0xff]  ;;  %v1698_v31 = vld [vmem:[%s5768_s9 + $0x68] sm:$0xff] }
 0x184   : > { %4345 = vmatpush3.bf16.msra.mxu1 %v4342_v29  ;;  %v1695_v27 = vld [vmem:[%s5768_s9 + $0x50] sm:$0xff]  ;;  %v1700_v34 = vld [vmem:[%s5768_s9 + $0x78] sm:$0xff]  ;;  %vm6013_vm1 = vmpackc.low %vm2068_vm0, %vm2068_vm0 }
 0x185   : > { %4347 = vmatprep.subr.bf16.mxu1 %v4346_v35  ;;  %v4386_v29 = vpack.c.bf16 %v1696_v28, %v1695_v27  ;;  %v1699_v33 = vld [vmem:[%s5768_s9 + $0x70] sm:$0xff] }
 0x186   : > { %4317 = vmatpush3.bf16.msra.mxu0 %v4314_v32  ;;  %v4390_v32 = vpack.c.bf16 %v1698_v31, %v1697_v30 }
 0x187   : > { %4319 = vmatprep.subr.bf16.mxu0 %v4318_v38 }
 0x188   : > { %4349 = vmatpush3.bf16.msra.mxu1 %v4346_v35  ;;  %v4394_v35 = vpack.c.bf16 %v1700_v34, %v1699_v33 }
 0x189   : > { %4351 = vmatprep.subr.bf16.mxu1 %v4350_v41 }
 0x18a   : > { %4321 = vmatpush3.bf16.msra.mxu0 %v4318_v38 }
 0x18b   : > { %4323 = vmatprep.subr.bf16.mxu0 %v4322_v45 }
 0x18c   : > { %4353 = vmatpush3.bf16.msra.mxu1 %v4350_v41 }
 0x18d   : > { %4355 = vmatprep.subr.bf16.mxu1 %v4354_v49 }
 0x18e   : > { %4325 = vmatpush3.bf16.msra.mxu0 %v4322_v45 }
 0x18f   : > { %4327 = vmatprep.subr.bf16.mxu0 %v4326_v50 }
 0x190   : > { %4357 = vmatpush3.bf16.msra.mxu1 %v4354_v49  ;;  %v1034_v49 = vunpack.c.0.s8 %v1033_v43 }
 0x191   : > { %4359 = vmatprep.subr.bf16.mxu1 %v4358_v53 }
 0x192   : > { %4329 = vmatpush3.bf16.msra.mxu0 %v4326_v50  ;;  %v5918_v50 = vshrl.u32 %v1035_v44, 7 }
 0x193   : > { %4331 = vmatprep.subr.bf16.mxu0 %v4330_v56 }
 0x194   : > { %4361 = vmatpush3.bf16.msra.mxu1 %v4358_v53  ;;  %v1066_v53 = vunpack.c.0.s8 %v1065_v48  ;;  %v5921_v54 = vsub.s32 %v1034_v49, %v5918_v50 }
 0x195   : > { %4363 = vmatprep.subr.bf16.mxu1 %v4362_v59 }
 0x196   : > { %4333 = vmatpush3.bf16.msra.mxu0 %v4330_v56 }
 0x197   : > { %4367 = vmatprep.subr.bf16.mxu0 %v4366_v62 }
 0x198   : > { %4365 = vmatpush3.bf16.msra.mxu1 %v4362_v59 }
 0x203   : > { %v881_v16 = vpop.xlane.xlu0 %880 }
 0x204   : > { %v885_v17 = vmul.f32 0.0078125, %v881_v16 }
 0x206   : > { %v5832_v18 = vsub.f32 %v876_v2, %v885_v17  ;;  %v4370_v17 = vpack.c.bf16 %v1688_v14, %v1687_v13 }
 0x207   : > { %v883_v19 = vpop.xlane.xlu0 %882 }
 0x208   : > { %v886_v20 = vmul.f32 0.0078125, %v883_v19  ;;  %v889_v21 = vmul.f32 %v5832_v18, %v5832_v18  ;;  %v1690_v19 = vld [vmem:[%s5768_s9 + $0x28] sm:$0xff] }
 0x20a   : > { %v5836_v22 = vsub.f32 %v877_v3, %v886_v20  ;;  %891 = vadd.xlane.f32.xlu1 %v889_v21  ;;  %v1691_v21 = vld [vmem:[%s5768_s9 + $0x30] sm:$0xff] }
 0x20c   : > { %v890_v23 = vmul.f32 %v5836_v22, %v5836_v22 }
 0x20e   : > { %893 = vadd.xlane.f32.xlu1 %v890_v23 }
 0x297   : > { %v892_v63 = vpop.xlane.xlu1 %891 }
 0x298   : > { %v895_v0 = vmul.f32 0.0078125, %v892_v63  ;;  %v5924_v63 = vsub.s32 %v1066_v53, %v5918_v50 }
 0x29a   : > { %v897_v1 = vadd.f32 1e-05, %v895_v0 }
 0x29b   : > { %v894_v2 = vpop.xlane.xlu1 %893 }
 0x29c   : > { %4703 = vrsqrt.f32 %v897_v1  ;;  %v896_v3 = vmul.f32 0.0078125, %v894_v2 }
 0x29e   : > { %v898_v4 = vadd.f32 1e-05, %v896_v3 }
 0x2a0   : > { %4705 = vrsqrt.f32 %v898_v4 }
 0x2a6   : > { %v4704_v5 = vpop.eup %4703 }
 0x2a7   : > { %v901_v7 = vmul.f32 %v4704_v5, %v5832_v18  ;;  %v1689_v18 = vld [vmem:[%s5768_s9 + $0x20] sm:$0xff] }
 0x2a8   : > { %v4374_v20 = vpack.c.bf16 %v1690_v19, %v1689_v18 }
 0x2a9   : > { %v909_v9 = vmul.f32 %v3903_v6, %v901_v7 }
 0x2aa   : > { %v4706_v10 = vpop.eup %4705 }
 0x2ab   : > { %v917_v11 = vadd.f32 %v3904_v8, %v909_v9  ;;  %v902_v12 = vmul.f32 %v4706_v10, %v5836_v22  ;;  %v1692_v22 = vld [vmem:[%s5768_s9 + $0x38] sm:$0xff] }
 0x2ac   : > { %v4378_v23 = vpack.c.bf16 %v1692_v22, %v1691_v21 }
 0x2ad   : > { %4138 = vmatprep.mubr.f32.mxu0 %v917_v11  ;;  %4173 = vmatprep.mubr.f32.mxu1 %v917_v11  ;;  %v910_v15 = vmul.f32 %v3903_v6, %v902_v12 }
 0x2af   : > { %v918_v16 = vadd.f32 %v3904_v8, %v910_v15 }
 0x2b1   : > { %4139 = vmatmul.mubr.f32.vlgmr.msra.gmra.mrb[0].mxu0 %v918_v16  ;;  %4174 = vmatmul.mubr.f32.vlgmr.msra.gmra.mrb[0].mxu1 %v918_v16 }
 0x2b2   : > { %4369 = vmatpush3.bf16.msra.mxu0 %v4366_v62  ;;  %4208 = vmatprep.mubr.f32.mxu0 %v917_v11 }
 0x2b3   : > { %4371 = vmatprep.subr.bf16.mxu0 %v4370_v17 }
 0x2b6   : > { %4373 = vmatpush3.bf16.msra.mxu0 %v4370_v17 }
 0x2b7   : > { %4375 = vmatprep.subr.bf16.mxu0 %v4374_v20 }
 0x2ba   : > { %4377 = vmatpush3.bf16.msra.mxu0 %v4374_v20 }
 0x2bb   : > { %4379 = vmatprep.subr.bf16.mxu0 %v4378_v23 }
 0x2be   : > { %4381 = vmatpush3.bf16.msra.mxu0 %v4378_v23 }
 0x2bf   : > { %4383 = vmatprep.subr.bf16.mxu0 %v4382_v26 }
 0x2c2   : > { %4385 = vmatpush3.bf16.msra.mxu0 %v4382_v26 }
 0x2c3   : > { %4387 = vmatprep.subr.bf16.mxu0 %v4386_v29 }
 0x2c6   : > { %4389 = vmatpush3.bf16.msra.mxu0 %v4386_v29 }
 0x2c7   : > { %4391 = vmatprep.subr.bf16.mxu0 %v4390_v32 }
 0x2ca   : > { %4393 = vmatpush3.bf16.msra.mxu0 %v4390_v32 }
 0x2cb   : > { %4395 = vmatprep.subr.bf16.mxu0 %v4394_v35 }
 0x2ce   : > { %4397 = vmatpush3.bf16.msra.mxu0 %v4394_v35 }
 0x2d1   : > { %4209 = vmatmul.mubr.f32.vlgmr.msra.gmra.mrb[2].mxu0 %v918_v16 }
 0x384   : > { %v5892_v36 = vpop.f32.mrb[0].mxu0  ;;  %v4175_v37 = vpop.f32.mrb[0].mxu1 }
 0x385   : > { %1397 = vrot.lane.b32.xlu1 %v4175_v37, %s5176_s10  ;;  %v5895_v38 = vpop.f32.mrb[1].mxu0  ;;  %v1384_v39 = vpop.f32.mrb[1].mxu1 }
 0x386   : > { %1395 = vrot.lane.b32.xlu0 %v1384_v39, %s5176_s10 }
 0x389   : > { %1403 = vrot.lane.b32.xlu1 %v4175_v37, %s5177_s29 }
 0x38a   : > { %1407 = vrot.lane.b32.xlu0 %v1384_v39, %s5178_s16 }
 0x38d   : > { %1409 = vrot.lane.b32.xlu1 %v4175_v37, %s5178_s16 }
 0x38e   : > { %1012 = vrot.lane.b32.xlu0 %v5895_v38, %s5176_s10 }
 0x391   : > { %1401 = vrot.lane.b32.xlu1 %v1384_v39, %s5177_s29 }
 0x392   : > { %1024 = vrot.lane.b32.xlu0 %v5895_v38, %s5178_s16 }
 0x395   : > { %1014 = vrot.lane.b32.xlu1 %v5892_v36, %s5176_s10 }
 0x396   : > { %1020 = vrot.lane.b32.xlu0 %v5892_v36, %s5177_s29 }
 0x399   : > { %1018 = vrot.lane.b32.xlu1 %v5895_v38, %s5177_s29 }
 0x39d   : > { %1026 = vrot.lane.b32.xlu1 %v5892_v36, %s5178_s16 }
 0x3a4   : > { %v5914_v40 = vpop.f32.mrb[2].mxu0 }
 0x3a5   : > { %v5916_v41 = vpop.f32.mrb[3].mxu0 }
 0x3f7   : > { %v1398_v45 = vpop.permute.xlu1 %1397 }
 0x3f8   : > { %v1396_v46 = vpop.permute.xlu0 %1395 }
 0x3fb   : > { %v1404_v51 = vpop.permute.xlu1 %1403 }
 0x3fc   : > { %v1408_v52 = vpop.permute.xlu0 %1407  ;;  %v1481_v55 = vcombine.low %v4175_v37, %v1404_v51  ;;  %v1482_v56 = vcombine.high %v4175_v37, %v1404_v51 }
 0x3fd   : > { %v1429_v57 = vcombine.low %v1396_v46, %v1408_v52  ;;  %v1430_v58 = vcombine.high %v1396_v46, %v1408_v52 }
 0x3fe   : > { %v1489_v0 = vrot.slane %v1481_v55, %v5921_v54  ;;  %v1496_v1 = vrot.slane %v1482_v56, %v5921_v54 }
 0x3ff   : > { %v1410_v59 = vpop.permute.xlu1 %1409  ;;  %v1437_v4 = vrot.slane %v1429_v57, %v5921_v54  ;;  %v1444_v5 = vrot.slane %v1430_v58, %v5921_v54 }
 0x400   : > { %v1497_v60 = vcombine.low %v1398_v45, %v1410_v59  ;;  %v1498_v61 = vcombine.high %v1398_v45, %v1410_v59  ;;  %v1013_v62 = vpop.permute.xlu0 %1012 }
 0x402   : > { %v1505_v2 = vrot.slane %v1497_v60, %v5921_v54  ;;  %v1512_v3 = vrot.slane %v1498_v61, %v5921_v54 }
 0x403   : > { %v1402_v6 = vpop.permute.xlu1 %1401 }
 0x404   : > { %v1513_v7 = vcombine.low %v1489_v0, %v1505_v2  ;;  %v1514_v8 = vcombine.high %v1489_v0, %v1505_v2  ;;  %v1529_v9 = vcombine.low %v1496_v1, %v1512_v3  ;;  %v1530_v10 = vcombine.high %v1496_v1, %v1512_v3  ;;  %v1025_v11 = vpop.permute.xlu0 %1024 }
 0x405   : > { %v1413_v12 = vcombine.low %v1384_v39, %v1402_v6  ;;  %v1414_v13 = vcombine.high %v1384_v39, %v1402_v6  ;;  %v1046_v14 = vcombine.low %v1013_v62, %v1025_v11  ;;  %v1047_v15 = vcombine.high %v1013_v62, %v1025_v11 }
 0x406   : > { %v1521_v16 = vrot.slane %v1513_v7, %v5924_v63  ;;  %v1528_v17 = vrot.slane %v1514_v8, %v5924_v63  ;;  %v1537_v18 = vrot.slane %v1529_v9, %v5924_v63  ;;  %v1544_v19 = vrot.slane %v1530_v10, %v5924_v63 }
 0x407   : > { %v1421_v20 = vrot.slane %v1413_v12, %v5921_v54  ;;  %v1428_v21 = vrot.slane %v1414_v13, %v5921_v54  ;;  %v1054_v22 = vrot.slane %v1046_v14, %v5921_v54  ;;  %v1061_v23 = vrot.slane %v1047_v15, %v5921_v54  ;;  %v1015_v24 = vpop.permute.xlu1 %1014 }
 0x408   : > { %v1617_v25 = vcombine.low %v1521_v16, %v1528_v17  ;;  %v3911_v26 = vcombine.high %v1521_v16, %v1528_v17  ;;  %v1633_v27 = vcombine.low %v1537_v18, %v1544_v19  ;;  %v3912_v28 = vcombine.high %v1537_v18, %v1544_v19  ;;  %v1021_v33 = vpop.permute.xlu0 %1020 }
 0x409   : > { %v1445_v29 = vcombine.low %v1421_v20, %v1437_v4  ;;  %v1446_v30 = vcombine.high %v1421_v20, %v1437_v4  ;;  %v1461_v31 = vcombine.low %v1428_v21, %v1444_v5  ;;  %v1462_v32 = vcombine.high %v1428_v21, %v1444_v5 }
 0x40a   : > { %v5941_v34 = vrot.slane %v1617_v25, %v5921_v54  ;;  %v5944_v35 = vrot.slane %v3911_v26, %v5921_v54  ;;  %v5947_v37 = vrot.slane %v1633_v27, %v5921_v54  ;;  %v5950_v39 = vrot.slane %v3912_v28, %v5921_v54 }
 0x40b   : > { %v1453_v42 = vrot.slane %v1445_v29, %v5924_v63  ;;  %v1460_v43 = vrot.slane %v1446_v30, %v5924_v63  ;;  %v1469_v44 = vrot.slane %v1461_v31, %v5924_v63  ;;  %v1476_v45 = vrot.slane %v1462_v32, %v5924_v63  ;;  %v1019_v46 = vpop.permute.xlu1 %1018 }
 0x40c   : > { %v1098_v47 = vcombine.low %v5892_v36, %v1021_v33  ;;  %v1099_v48 = vcombine.high %v5892_v36, %v1021_v33  ;;  %v1030_v49 = vcombine.low %v5895_v38, %v1019_v46  ;;  %v1031_v51 = vcombine.high %v5895_v38, %v1019_v46 }
 0x40d   : > { %v1549_v52 = vcombine.low %v1453_v42, %v1460_v43  ;;  %v3909_v53 = vcombine.high %v1453_v42, %v1460_v43  ;;  %v1565_v55 = vcombine.low %v1469_v44, %v1476_v45  ;;  %v3910_v56 = vcombine.high %v1469_v44, %v1476_v45 }
 0x40e   : > { %v1106_v57 = vrot.slane %v1098_v47, %v5921_v54  ;;  %v1113_v58 = vrot.slane %v1099_v48, %v5921_v54  ;;  %v1038_v59 = vrot.slane %v1030_v49, %v5921_v54  ;;  %v1045_v60 = vrot.slane %v1031_v51, %v5921_v54 }
 0x40f   : > { %v5965_v61 = vrot.slane %v1549_v52, %v5921_v54  ;;  %v5968_v36 = vrot.slane %v3909_v53, %v5921_v54  ;;  %v5971_v38 = vrot.slane %v1565_v55, %v5921_v54  ;;  %v5974_v62 = vrot.slane %v3910_v56, %v5921_v54  ;;  %v1027_v0 = vpop.permute.xlu1 %1026 }
 0x410   : > { %v1062_v1 = vcombine.low %v1038_v59, %v1054_v22  ;;  %v1063_v2 = vcombine.high %v1038_v59, %v1054_v22  ;;  %v1078_v3 = vcombine.low %v1045_v60, %v1061_v23  ;;  %v1079_v4 = vcombine.high %v1045_v60, %v1061_v23 }
 0x411   : > { %v1114_v5 = vcombine.low %v1015_v24, %v1027_v0  ;;  %v1115_v6 = vcombine.high %v1015_v24, %v1027_v0  ;;  %v1581_v7 = vcombine.low %v5965_v61, %v5968_v36  ;;  %v1597_v8 = vcombine.low %v5971_v38, %v5974_v62 }
 0x412   : > { %v1070_v9 = vrot.slane %v1062_v1, %v5924_v63  ;;  %v1077_v10 = vrot.slane %v1063_v2, %v5924_v63  ;;  %v1086_v11 = vrot.slane %v1078_v3, %v5924_v63  ;;  %v1093_v12 = vrot.slane %v1079_v4, %v5924_v63 }
 0x413   : > { %v1122_v13 = vrot.slane %v1114_v5, %v5921_v54  ;;  %v1129_v14 = vrot.slane %v1115_v6, %v5921_v54  ;;  %v1589_v15 = vrot.slane %v1581_v7, %v5924_v63  ;;  %v1605_v16 = vrot.slane %v1597_v8, %v5924_v63 }
 0x414   : > { %v1166_v17 = vcombine.low %v1070_v9, %v1077_v10  ;;  %v3905_v18 = vcombine.high %v1070_v9, %v1077_v10  ;;  %v1182_v19 = vcombine.low %v1086_v11, %v1093_v12  ;;  %v3906_v20 = vcombine.high %v1086_v11, %v1093_v12 }
 0x415   : > { %v1130_v21 = vcombine.low %v1106_v57, %v1122_v13  ;;  %v1131_v22 = vcombine.high %v1106_v57, %v1122_v13  ;;  %v1146_v23 = vcombine.low %v1113_v58, %v1129_v14  ;;  %v1147_v24 = vcombine.high %v1113_v58, %v1129_v14 }
 0x416   : > { %v5989_v25 = vrot.slane %v1166_v17, %v5921_v54  ;;  %v1181_v26 = vrot.slane %v3905_v18, %v5921_v54  ;;  %v1189_v27 = vrot.slane %v1182_v19, %v5921_v54  ;;  %v1197_v28 = vrot.slane %v3906_v20, %v5921_v54 }
 0x417   : > { %v1138_v29 = vrot.slane %v1130_v21, %v5924_v63  ;;  %v1145_v30 = vrot.slane %v1131_v22, %v5924_v63  ;;  %v1154_v31 = vrot.slane %v1146_v23, %v5924_v63  ;;  %v1161_v32 = vrot.slane %v1147_v24, %v5924_v63 }
 0x418   : > { %v1613_v33 = vcombine.low %v1589_v15, %v1605_v16  ;;  %v1649_v42 = vcombine.low %v5941_v34, %v5944_v35  ;;  %v1665_v43 = vcombine.low %v5947_v37, %v5950_v39  ;;  %v1614_v44 = vcombine.high %v1589_v15, %v1605_v16 }
 0x419   : > { %v1234_v45 = vcombine.low %v1138_v29, %v1145_v30  ;;  %v3907_v46 = vcombine.high %v1138_v29, %v1145_v30  ;;  %v1250_v47 = vcombine.low %v1154_v31, %v1161_v32  ;;  %v3908_v48 = vcombine.high %v1154_v31, %v1161_v32 }
 0x41a   : > { %v1657_v49 = vrot.slane %v1649_v42, %v5924_v63  ;;  %v1673_v51 = vrot.slane %v1665_v43, %v5924_v63  ;;  %v1198_v52 = vcombine.low %v5989_v25, %v1181_v26  ;;  %v1214_v53 = vcombine.low %v1189_v27, %v1197_v28 }
 0x41b   : > { %v1241_v55 = vrot.slane %v1234_v45, %v5921_v54  ;;  %v1249_v56 = vrot.slane %v3907_v46, %v5921_v54  ;;  %v1257_v57 = vrot.slane %v1250_v47, %v5921_v54  ;;  %v1265_v58 = vrot.slane %v3908_v48, %v5921_v54 }
 0x41c   : > { %v1681_v59 = vcombine.low %v1657_v49, %v1673_v51  ;;  %v1682_v60 = vcombine.high %v1657_v49, %v1673_v51  ;;  %v1206_v0 = vrot.slane %v1198_v52, %v5924_v63  ;;  %v1222_v1 = vrot.slane %v1214_v53, %v5924_v63 }
 0x41d   : > { %v1266_v2 = vcombine.low %v1241_v55, %v1249_v56  ;;  %v1282_v3 = vcombine.low %v1257_v57, %v1265_v58  ;;  %v1582_v9 = vcombine.high %v5965_v61, %v5968_v36  ;;  %v1598_v10 = vcombine.high %v5971_v38, %v5974_v62 }
 0x41e   : > { %v4398_v5 = vpack.c.bf16 %v1681_v59, %v1613_v33  ;;  %v4404_v6 = vpack.c.bf16 %v1682_v60, %v1614_v44  ;;  %v1230_v7 = vcombine.low %v1206_v0, %v1222_v1  ;;  %v1650_v12 = vcombine.high %v5941_v34, %v5944_v35 }
 0x41f   : > { %v1274_v8 = vrot.slane %v1266_v2, %v5924_v63  ;;  %v1290_v11 = vrot.slane %v1282_v3, %v5924_v63  ;;  %v1666_v13 = vcombine.high %v5947_v37, %v5950_v39  ;;  %v1596_v61 = vrot.slane %v1582_v9, %v5924_v63 }
 0x420   : > { %4400 = vmatprep.subr.msk.bf16.mxu1 %vm6013_vm1, %v4398_v5  ;;  %4215 = vmatprep.mubr.msk.f32.mxu1 %vm2068_vm0, %v1230_v7  ;;  %v1612_v36 = vrot.slane %v1598_v10, %v5924_v63  ;;  %v1664_v38 = vrot.slane %v1650_v12, %v5924_v63  ;;  %v1231_v17 = vcombine.high %v1206_v0, %v1222_v1 }
 0x421   : > { %4403 = vmatpush3.bf16.xpose.msk.msra.mxu1 %vm6013_vm1, %v4398_v5  ;;  %v1680_v62 = vrot.slane %v1666_v13, %v5924_v63  ;;  %v1298_v34 = vcombine.low %v1274_v8, %v1290_v11  ;;  %v1199_v18 = vcombine.high %v5989_v25, %v1181_v26  ;;  %v1215_v19 = vcombine.high %v1189_v27, %v1197_v28 }
 0x422   : > { %4406 = vmatprep.subr.msk.bf16.mxu1 %vm6013_vm1, %v4404_v6  ;;  %v1615_v14 = vcombine.low %v1596_v61, %v1612_v36  ;;  %v1616_v15 = vcombine.high %v1596_v61, %v1612_v36  ;;  %v1267_v22 = vcombine.high %v1241_v55, %v1249_v56  ;;  %v1283_v23 = vcombine.high %v1257_v57, %v1265_v58 }
 0x423   : > { %v1683_v35 = vcombine.low %v1664_v38, %v1680_v62  ;;  %v1684_v16 = vcombine.high %v1664_v38, %v1680_v62  ;;  %v1213_v20 = vrot.slane %v1199_v18, %v5924_v63  ;;  %v1229_v21 = vrot.slane %v1215_v19, %v5924_v63 }
 0x424   : > { %v1299_v24 = vcombine.high %v1274_v8, %v1290_v11  ;;  %v1281_v25 = vrot.slane %v1267_v22, %v5924_v63  ;;  %v1297_v26 = vrot.slane %v1283_v23, %v5924_v63 }
 0x425   : > { %v4410_v37 = vpack.c.bf16 %v1683_v35, %v1615_v14  ;;  %v4416_v39 = vpack.c.bf16 %v1684_v16, %v1616_v15  ;;  %v1232_v29 = vcombine.low %v1213_v20, %v1229_v21  ;;  %v1233_v28 = vcombine.high %v1213_v20, %v1229_v21 }
 0x426   : > { %v1300_v27 = vcombine.low %v1281_v25, %v1297_v26  ;;  %v1301_v30 = vcombine.high %v1281_v25, %v1297_v26 }
 0x428   : > { %4216 = vmatmul.mubr.msk.f32.vlgmr.msra.gmra.mrb[2].mxu1 %vm2068_vm0, %v1298_v34 }
 0x429   : > { %4409 = vmatpush3.bf16.xpose.msk.msra.mxu1 %vm6013_vm1, %v4404_v6  ;;  %4222 = vmatprep.mubr.msk.f32.mxu1 %vm2068_vm0, %v1231_v17 }
 0x42a   : > { %4412 = vmatprep.subr.msk.bf16.mxu1 %vm6013_vm1, %v4410_v37 }
 0x430   : > { %4223 = vmatmul.mubr.msk.f32.vlgmr.msra.gmra.mrb[4].mxu1 %vm2068_vm0, %v1299_v24 }
 0x431   : > { %4415 = vmatpush3.bf16.xpose.msk.msra.mxu1 %vm6013_vm1, %v4410_v37  ;;  %4229 = vmatprep.mubr.msk.f32.mxu1 %vm2068_vm0, %v1232_v29 }
 0x432   : > { %4418 = vmatprep.subr.msk.bf16.mxu1 %vm6013_vm1, %v4416_v39 }
 0x438   : > { %4230 = vmatmul.mubr.msk.f32.vlgmr.msra.gmra.mrb[6].mxu1 %vm2068_vm0, %v1300_v27 }
 0x439   : > { %4421 = vmatpush3.bf16.xpose.msk.msra.mxu1 %vm6013_vm1, %v4416_v39  ;;  %4236 = vmatprep.mubr.msk.f32.mxu1 %vm2068_vm0, %v1233_v28 }
 0x440   : > { %4237 = vmatmul.mubr.msk.f32.vlgmr.msra.gmra.mrb[8].mxu1 %vm2068_vm0, %v1301_v30 }
 0x4fb   : > { %v4217_v31 = vpop.f32.mrb[2].mxu1 }
 0x4fc   : > { %v2418_v32 = vmul.f32 0.17677669, %v4217_v31  ;;  %v2147_v33 = vpop.f32.mrb[3].mxu1 }
 0x4fd   : > { %v2417_v42 = vmul.f32 0.17677669, %v2147_v33 }
 0x4fe   : > { %v2429_v43 = vsel %vm2425_vm2, %v2418_v32, -inf }
 0x4ff   : > { %2430 = vmax.xlane.f32.xlu1 %v2429_v43  ;;  %v2426_v44 = vsel %vm2425_vm2, %v2417_v42, -inf }
 0x500   : > { %2427 = vmax.xlane.f32.xlu0 %v2426_v44 }
 0x503   : > { %v4224_v45 = vpop.f32.mrb[4].mxu1 }
 0x504   : > { %v2420_v46 = vmul.f32 0.17677669, %v4224_v45  ;;  %v2234_v47 = vpop.f32.mrb[5].mxu1 }
 0x505   : > { %v2419_v48 = vmul.f32 0.17677669, %v2234_v47 }
 0x506   : > { %v2435_v49 = vsel %vm2425_vm2, %v2420_v46, -inf }
 0x507   : > { %2436 = vmax.xlane.f32.xlu0 %v2435_v49  ;;  %v2432_v51 = vsel %vm2425_vm2, %v2419_v48, -inf }
 0x50b   : > { %2433 = vmax.xlane.f32.xlu0 %v2432_v51  ;;  %v4231_v52 = vpop.f32.mrb[6].mxu1 }
 0x50c   : > { %v2422_v53 = vmul.f32 0.17677669, %v4231_v52  ;;  %v2321_v55 = vpop.f32.mrb[7].mxu1 }
 0x50d   : > { %v2421_v56 = vmul.f32 0.17677669, %v2321_v55 }
 0x50e   : > { %v2441_v57 = vsel %vm2425_vm2, %v2422_v53, -inf }
 0x50f   : > { %2442 = vmax.xlane.f32.xlu1 %v2441_v57  ;;  %v2438_v58 = vsel %vm2425_vm2, %v2421_v56, -inf }
 0x510   : > { %2439 = vmax.xlane.f32.xlu0 %v2438_v58 }
 0x513   : > { %v4238_v59 = vpop.f32.mrb[8].mxu1 }
 0x514   : > { %v2424_v60 = vmul.f32 0.17677669, %v4238_v59  ;;  %v2408_v0 = vpop.f32.mrb[9].mxu1 }
 0x515   : > { %v2423_v1 = vmul.f32 0.17677669, %v2408_v0 }
 0x516   : > { %v2447_v2 = vsel %vm2425_vm2, %v2424_v60, -inf }
 0x517   : > { %2448 = vmax.xlane.f32.xlu1 %v2447_v2  ;;  %v2444_v3 = vsel %vm2425_vm2, %v2423_v1, -inf }
 0x518   : > { %2445 = vmax.xlane.f32.xlu0 %v2444_v3 }
 0x528   : > { %1780 = vrot.lane.b32.xlu1 %v5914_v40, %s5176_s10 }
 0x52c   : > { %1784 = vrot.lane.b32.xlu1 %v5916_v41, %s5177_s29 }
 0x52e   : > { %1778 = vrot.lane.b32.xlu0 %v5916_v41, %s5176_s10 }
 0x530   : > { %1786 = vrot.lane.b32.xlu1 %v5914_v40, %s5177_s29 }
 0x532   : > { %1790 = vrot.lane.b32.xlu0 %v5916_v41, %s5178_s16 }
 0x534   : > { %1792 = vrot.lane.b32.xlu1 %v5914_v40, %s5178_s16 }
 0x58c   : > { %v2431_v4 = vpop.xlane.xlu1 %2430 }
 0x58d   : > { %v2451_v5 = vsub.f32 %v2418_v32, %v2431_v4  ;;  %v2428_v6 = vpop.xlane.xlu0 %2427 }
 0x58e   : > { %v2450_v7 = vsub.f32 %v2417_v42, %v2428_v6 }
 0x58f   : > { %v2460_v8 = vmul.f32 1.442695, %v2451_v5 }
 0x590   : > { %v2458_v9 = vmul.f32 1.442695, %v2450_v7 }
 0x591   : > { %4707 = vpow2.f32 %v2460_v8 }
 0x592   : > { %4709 = vpow2.f32 %v2458_v9 }
 0x594   : > { %v2437_v10 = vpop.xlane.xlu0 %2436 }
 0x595   : > { %v2453_v11 = vsub.f32 %v2420_v46, %v2437_v10 }
 0x597   : > { %v2464_v12 = vmul.f32 1.442695, %v2453_v11 }
 0x598   : > { %v2434_v13 = vpop.xlane.xlu0 %2433 }
 0x599   : > { %4711 = vpow2.f32 %v2464_v12  ;;  %v2452_v61 = vsub.f32 %v2419_v48, %v2434_v13 }
 0x59b   : > { %v6080_v36 = vpop.eup %4707  ;;  %v2462_v38 = vmul.f32 1.442695, %v2452_v61 }
 0x59c   : > { %v6082_v62 = vpop.eup %4709  ;;  %v2443_v14 = vpop.xlane.xlu1 %2442  ;;  %v2477_v15 = vsel %vm2425_vm2, %v6080_v36, 0.0 }
 0x59d   : > { %4713 = vpow2.f32 %v2462_v38  ;;  %v2455_v34 = vsub.f32 %v2422_v53, %v2443_v14  ;;  %v2440_v35 = vpop.xlane.xlu0 %2439  ;;  %2478 = vadd.xlane.f32.xlu1 %v2477_v15  ;;  %v2474_v16 = vsel %vm2425_vm2, %v6082_v62, 0.0 }
 0x59e   : > { %v2454_v37 = vsub.f32 %v2421_v56, %v2440_v35  ;;  %2475 = vadd.xlane.f32.xlu0 %v2474_v16 }
 0x59f   : > { %v2468_v39 = vmul.f32 1.442695, %v2455_v34 }
 0x5a0   : > { %v2466_v17 = vmul.f32 1.442695, %v2454_v37 }
 0x5a1   : > { %4715 = vpow2.f32 %v2468_v39 }
 0x5a2   : > { %4717 = vpow2.f32 %v2466_v17 }
 0x5a3   : > { %v6088_v18 = vpop.eup %4711 }
 0x5a4   : > { %v2449_v19 = vpop.xlane.xlu1 %2448  ;;  %v2483_v20 = vsel %vm2425_vm2, %v6088_v18, 0.0 }
 0x5a5   : > { %v2457_v21 = vsub.f32 %v2424_v60, %v2449_v19  ;;  %v2446_v22 = vpop.xlane.xlu0 %2445  ;;  %2484 = vadd.xlane.f32.xlu1 %v2483_v20 }
 0x5a6   : > { %v2456_v23 = vsub.f32 %v2423_v1, %v2446_v22 }
 0x5a7   : > { %v6092_v24 = vpop.eup %4713  ;;  %v2472_v29 = vmul.f32 1.442695, %v2457_v21 }
 0x5a8   : > { %v2470_v25 = vmul.f32 1.442695, %v2456_v23  ;;  %v1781_v26 = vpop.permute.xlu1 %1780  ;;  %v2480_v27 = vsel %vm2425_vm2, %v6092_v24, 0.0 }
 0x5a9   : > { %4719 = vpow2.f32 %v2472_v29  ;;  %2481 = vadd.xlane.f32.xlu0 %v2480_v27  ;;  %v1779_v28 = vpop.permute.xlu0 %1778 }
 0x5aa   : > { %4721 = vpow2.f32 %v2470_v25 }
 0x5ab   : > { %v6096_v30 = vpop.eup %4715 }
 0x5ac   : > { %v1785_v31 = vpop.permute.xlu1 %1784  ;;  %v2489_v32 = vsel %vm2425_vm2, %v6096_v30, 0.0  ;;  %v6100_v33 = vpop.eup %4717 }
 0x5ad   : > { %v1796_v42 = vcombine.low %v5916_v41, %v1785_v31  ;;  %v1797_v43 = vcombine.high %v5916_v41, %v1785_v31  ;;  %2490 = vadd.xlane.f32.xlu0 %v2489_v32  ;;  %v1791_v44 = vpop.permute.xlu0 %1790  ;;  %v2486_v53 = vsel %vm2425_vm2, %v6100_v33, 0.0 }
 0x5ae   : > { %v1812_v45 = vcombine.low %v1779_v28, %v1791_v44  ;;  %v1813_v46 = vcombine.high %v1779_v28, %v1791_v44 }
 0x5af   : > { %v1804_v47 = vrot.slane %v1796_v42, %v5921_v54  ;;  %v1811_v48 = vrot.slane %v1797_v43, %v5921_v54 }
 0x5b0   : > { %v1820_v49 = vrot.slane %v1812_v45, %v5921_v54  ;;  %v1827_v51 = vrot.slane %v1813_v46, %v5921_v54  ;;  %v1787_v52 = vpop.permute.xlu1 %1786 }
 0x5b1   : > { %2487 = vadd.xlane.f32.xlu0 %v2486_v53  ;;  %v1864_v59 = vcombine.low %v5914_v40, %v1787_v52  ;;  %v1865_v60 = vcombine.high %v5914_v40, %v1787_v52 }
 0x5b2   : > { %v1828_v55 = vcombine.low %v1804_v47, %v1820_v49  ;;  %v1829_v56 = vcombine.high %v1804_v47, %v1820_v49  ;;  %v1844_v41 = vcombine.low %v1811_v48, %v1827_v51  ;;  %v1845_v57 = vcombine.high %v1811_v48, %v1827_v51 }
 0x5b3   : > { %v6110_v58 = vpop.eup %4719  ;;  %v1872_v13 = vrot.slane %v1864_v59, %v5921_v54  ;;  %v1879_v61 = vrot.slane %v1865_v60, %v5921_v54 }
 0x5b4   : > { %v6114_v0 = vpop.eup %4721  ;;  %v1836_v1 = vrot.slane %v1828_v55, %v5924_v63  ;;  %v1843_v2 = vrot.slane %v1829_v56, %v5924_v63  ;;  %v1852_v3 = vrot.slane %v1844_v41, %v5924_v63  ;;  %v1859_v4 = vrot.slane %v1845_v57, %v5924_v63  ;;  %v1793_v5 = vpop.permute.xlu1 %1792 }
 0x5b5   : > { %v1880_v6 = vcombine.low %v1781_v26, %v1793_v5  ;;  %v1881_v7 = vcombine.high %v1781_v26, %v1793_v5  ;;  %v2495_v8 = vsel %vm2425_vm2, %v6110_v58, 0.0  ;;  %v2492_v9 = vsel %vm2425_vm2, %v6114_v0, 0.0 }
 0x5b6   : > { %v1932_v40 = vcombine.low %v1836_v1, %v1843_v2  ;;  %v3913_v10 = vcombine.high %v1836_v1, %v1843_v2  ;;  %v1948_v11 = vcombine.low %v1852_v3, %v1859_v4  ;;  %v3914_v12 = vcombine.high %v1852_v3, %v1859_v4  ;;  %2496 = vadd.xlane.f32.xlu1 %v2495_v8 }
 0x5b7   : > { %v1888_v38 = vrot.slane %v1880_v6, %v5921_v54  ;;  %v1895_v14 = vrot.slane %v1881_v7, %v5921_v54  ;;  %2493 = vadd.xlane.f32.xlu0 %v2492_v9 }
 0x5b8   : > { %v1939_v15 = vrot.slane %v1932_v40, %v5921_v54  ;;  %v1947_v34 = vrot.slane %v3913_v10, %v5921_v54  ;;  %v1955_v35 = vrot.slane %v1948_v11, %v5921_v54  ;;  %v1963_v16 = vrot.slane %v3914_v12, %v5921_v54 }
 0x5b9   : > { %v1896_v37 = vcombine.low %v1872_v13, %v1888_v38  ;;  %v1897_v39 = vcombine.high %v1872_v13, %v1888_v38  ;;  %v1912_v17 = vcombine.low %v1879_v61, %v1895_v14  ;;  %v1913_v19 = vcombine.high %v1879_v61, %v1895_v14 }
 0x5ba   : > { %v1965_v20 = vcombine.high %v1939_v15, %v1947_v34  ;;  %v1981_v21 = vcombine.high %v1955_v35, %v1963_v16  ;;  %v1964_v26 = vcombine.low %v1939_v15, %v1947_v34  ;;  %v1980_v27 = vcombine.low %v1955_v35, %v1963_v16 }
 0x5bb   : > { %v1904_v22 = vrot.slane %v1896_v37, %v5924_v63  ;;  %v1911_v23 = vrot.slane %v1897_v39, %v5924_v63  ;;  %v1920_v29 = vrot.slane %v1912_v17, %v5924_v63  ;;  %v1927_v25 = vrot.slane %v1913_v19, %v5924_v63 }
 0x5bc   : > { %v1979_v28 = vrot.slane %v1965_v20, %v5924_v63  ;;  %v1995_v31 = vrot.slane %v1981_v21, %v5924_v63  ;;  %v1972_v52 = vrot.slane %v1964_v26, %v5924_v63  ;;  %v1988_v53 = vrot.slane %v1980_v27, %v5924_v63  ;;  %v3144_v27 = vld [vmem:[%s5775_s14 + $0x10] sm:$0xff] }
 0x5bd   : > { %v2000_v32 = vcombine.low %v1904_v22, %v1911_v23  ;;  %v3915_v42 = vcombine.high %v1904_v22, %v1911_v23  ;;  %v2016_v43 = vcombine.low %v1920_v29, %v1927_v25  ;;  %v3916_v44 = vcombine.high %v1920_v29, %v1927_v25 }
 0x5be   : > { %v1998_v45 = vcombine.low %v1979_v28, %v1995_v31  ;;  %v1999_v46 = vcombine.high %v1979_v28, %v1995_v31  ;;  %v1996_v3 = vcombine.low %v1972_v52, %v1988_v53  ;;  %v1997_v4 = vcombine.high %v1972_v52, %v1988_v53  ;;  %v3145_v31 = vld [vmem:[%s5775_s14 + $0x18] sm:$0xff] }
 0x5bf   : > { %v2007_v47 = vrot.slane %v2000_v32, %v5921_v54  ;;  %v2015_v48 = vrot.slane %v3915_v42, %v5921_v54  ;;  %v2023_v49 = vrot.slane %v2016_v43, %v5921_v54  ;;  %v2031_v51 = vrot.slane %v3916_v44, %v5921_v54  ;;  %v3146_v42 = vld [vmem:[%s5775_s14 + $0x20] sm:$0xff]  ;;  %v3147_v43 = vld [vmem:[%s5775_s14 + $0x28] sm:$0xff]  ;;  %v3149_v44 = vld [vmem:[%s5775_s14 + $0x38] sm:$0xff] }
 0x5c0   : > { %v4442_v32 = vpack.c.bf16 %v3145_v31, %v3144_v27 }
 0x5c1   : > { %v2032_v55 = vcombine.low %v2007_v47, %v2015_v48  ;;  %v2048_v56 = vcombine.low %v2023_v49, %v2031_v51  ;;  %v2033_v41 = vcombine.high %v2007_v47, %v2015_v48  ;;  %v2049_v57 = vcombine.high %v2023_v49, %v2031_v51  ;;  %v3151_v47 = vld [vmem:[%s5775_s14 + $0x48] sm:$0xff]  ;;  %v3152_v49 = vld [vmem:[%s5775_s14 + $0x50] sm:$0xff]  ;;  %v3153_v51 = vld [vmem:[%s5775_s14 + $0x58] sm:$0xff] }
 0x5c2   : > { %v4458_v52 = vpack.c.bf16 %v3153_v51, %v3152_v49 }
 0x5c3   : > { %v2040_v59 = vrot.slane %v2032_v55, %v5924_v63  ;;  %v2056_v60 = vrot.slane %v2048_v56, %v5924_v63  ;;  %v2047_v1 = vrot.slane %v2033_v41, %v5924_v63  ;;  %v2063_v2 = vrot.slane %v2049_v57, %v5924_v63 }
 0x5c5   : > { %v2064_v5 = vcombine.low %v2040_v59, %v2056_v60  ;;  %v2065_v6 = vcombine.high %v2040_v59, %v2056_v60  ;;  %v2066_v7 = vcombine.low %v2047_v1, %v2063_v2  ;;  %v2067_v8 = vcombine.high %v2047_v1, %v2063_v2 }
 0x5c7   : > { %v4422_v9 = vpack.c.bf16 %v2064_v5, %v1996_v3  ;;  %v4426_v40 = vpack.c.bf16 %v2065_v6, %v1997_v4  ;;  %v4430_v10 = vpack.c.bf16 %v2066_v7, %v1998_v45  ;;  %v4434_v11 = vpack.c.bf16 %v2067_v8, %v1999_v46  ;;  %v3150_v46 = vld [vmem:[%s5775_s14 + $0x40] sm:$0xff] }
 0x5c8   : > { %v4454_v48 = vpack.c.bf16 %v3151_v47, %v3150_v46 }
 0x5c9   : > { %4423 = vmatprep.subr.bf16.mxu1 %v4422_v9 }
 0x5ca   : > { %4425 = vmatpush3.bf16.msra.mxu1 %v4422_v9 }
 0x5cb   : > { %4427 = vmatprep.subr.bf16.mxu1 %v4426_v40 }
 0x62a   : > { %v2479_v12 = vpop.xlane.xlu1 %2478 }
 0x62b   : > { %4723 = vrcp.f32 %v2479_v12  ;;  %v2476_v13 = vpop.xlane.xlu0 %2475 }
 0x62c   : > { %4725 = vrcp.f32 %v2476_v13 }
 0x632   : > { %v2485_v61 = vpop.xlane.xlu1 %2484 }
 0x633   : > { %4727 = vrcp.f32 %v2485_v61 }
 0x635   : > { %v4724_v38 = vpop.eup %4723 }
 0x636   : > { %v4726_v14 = vpop.eup %4725  ;;  %v2482_v15 = vpop.xlane.xlu0 %2481  ;;  %v2507_v35 = vmul.f32 %v4724_v38, %v6080_v36 }
 0x637   : > { %4729 = vrcp.f32 %v2482_v15  ;;  %v2506_v34 = vmul.f32 %v4726_v14, %v6082_v62 }
 0x639   : > { %4243 = vmatprep.mubr.msk.f32.mxu1 %vm2425_vm2, %v2506_v34 }
 0x63a   : > { %v2491_v16 = vpop.xlane.xlu0 %2490  ;;  %4244 = vmatmul.mubr.msk.f32.vlgmr.msra.gmra.mrb[10].mxu1 %vm2425_vm2, %v2507_v35 }
 0x63b   : > { %4429 = vmatpush3.bf16.msra.mxu1 %v4426_v40  ;;  %4731 = vrcp.f32 %v2491_v16 }
 0x63c   : > { %4431 = vmatprep.subr.bf16.mxu1 %v4430_v10 }
 0x63d   : > { %v4728_v39 = vpop.eup %4727 }
 0x63e   : > { %v2488_v37 = vpop.xlane.xlu0 %2487  ;;  %v2509_v20 = vmul.f32 %v4728_v39, %v6088_v18 }
 0x63f   : > { %4733 = vrcp.f32 %v2488_v37 }
 0x641   : > { %v4730_v17 = vpop.eup %4729 }
 0x642   : > { %v2508_v19 = vmul.f32 %v4730_v17, %v6092_v24 }
 0x643   : > { %v2497_v21 = vpop.xlane.xlu1 %2496 }
 0x644   : > { %4735 = vrcp.f32 %v2497_v21  ;;  %v2494_v62 = vpop.xlane.xlu0 %2493  ;;  %4250 = vmatprep.mubr.msk.f32.mxu1 %vm2425_vm2, %v2508_v19 }
 0x645   : > { %4737 = vrcp.f32 %v2494_v62  ;;  %4251 = vmatmul.mubr.msk.f32.vlgmr.msra.gmra.mrb[12].mxu1 %vm2425_vm2, %v2509_v20  ;;  %v4732_v36 = vpop.eup %4731 }
 0x646   : > { %4433 = vmatpush3.bf16.msra.mxu1 %v4430_v10  ;;  %v2511_v18 = vmul.f32 %v4732_v36, %v6096_v30  ;;  %v3142_v30 = vld [vmem:[%s5775_s14] sm:$0xff] }
 0x647   : > { %4435 = vmatprep.subr.bf16.mxu1 %v4434_v11 }
 0x649   : > { %v4734_v22 = vpop.eup %4733 }
 0x64a   : > { %v2510_v24 = vmul.f32 %v4734_v22, %v6100_v33  ;;  %v3143_v33 = vld [vmem:[%s5775_s14 + $0x8] sm:$0xff] }
 0x64b   : > { %v4438_v28 = vpack.c.bf16 %v3143_v33, %v3142_v30 }
 0x64c   : > { %4257 = vmatprep.mubr.msk.f32.mxu1 %vm2425_vm2, %v2510_v24 }
 0x64d   : > { %4258 = vmatmul.mubr.msk.f32.vlgmr.msra.gmra.mrb[14].mxu1 %vm2425_vm2, %v2511_v18  ;;  %4439 = vmatprep.subr.bf16.mxu0 %v4438_v28 }
 0x64e   : > { %v4736_v23 = vpop.eup %4735  ;;  %4437 = vmatpush3.bf16.msra.mxu1 %v4434_v11  ;;  %4441 = vmatpush3.bf16.msra.mxu0 %v4438_v28 }
 0x64f   : > { %v4738_v29 = vpop.eup %4737  ;;  %v2513_v26 = vmul.f32 %v4736_v23, %v6110_v58  ;;  %4443 = vmatprep.subr.bf16.mxu0 %v4442_v32  ;;  %v4446_v58 = vpack.c.bf16 %v3147_v43, %v3146_v42 }
 0x650   : > { %v2512_v25 = vmul.f32 %v4738_v29, %v6114_v0  ;;  %v3148_v0 = vld [vmem:[%s5775_s14 + $0x30] sm:$0xff] }
 0x651   : > { %v4450_v45 = vpack.c.bf16 %v3149_v44, %v3148_v0 }
 0x652   : > { %4264 = vmatprep.mubr.msk.f32.mxu1 %vm2425_vm2, %v2512_v25  ;;  %4445 = vmatpush3.bf16.msra.mxu0 %v4442_v32 }
 0x653   : > { %4265 = vmatmul.mubr.msk.f32.vlgmr.msra.gmra.mrb[16].mxu1 %vm2425_vm2, %v2513_v26  ;;  %4447 = vmatprep.subr.bf16.mxu0 %v4446_v58 }
 0x656   : > { %4449 = vmatpush3.bf16.msra.mxu0 %v4446_v58 }
 0x657   : > { %4451 = vmatprep.subr.bf16.mxu0 %v4450_v45 }
 0x65a   : > { %4453 = vmatpush3.bf16.msra.mxu0 %v4450_v45 }
 0x65b   : > { %4455 = vmatprep.subr.bf16.mxu0 %v4454_v48 }
 0x65e   : > { %4457 = vmatpush3.bf16.msra.mxu0 %v4454_v48 }
 0x65f   : > { %4459 = vmatprep.subr.bf16.mxu0 %v4458_v52 }
 0x662   : > { %4461 = vmatpush3.bf16.msra.mxu0 %v4458_v52 }
 0x70d   : > { %v4245_v53 = vpop.f32.mrb[10].mxu1 }
 0x70e   : > { %v2586_v55 = vpop.f32.mrb[11].mxu1 }
 0x718   : > { %v4252_v56 = vpop.f32.mrb[12].mxu1 }
 0x719   : > { %v2667_v41 = vpop.f32.mrb[13].mxu1 }
 0x720   : > { %v4259_v57 = vpop.f32.mrb[14].mxu1 }
 0x721   : > { %v2906_v59 = vcombine.low %v4245_v53, %v4259_v57  ;;  %v2907_v60 = vcombine.high %v4245_v53, %v4259_v57  ;;  %v2748_v1 = vpop.f32.mrb[15].mxu1 }
 0x722   : > { %v2838_v2 = vcombine.low %v2586_v55, %v2748_v1  ;;  %v2839_v3 = vcombine.high %v2586_v55, %v2748_v1 }
 0x723   : > { %v2914_v40 = vrot.slane %v2906_v59, %v5921_v54  ;;  %v2921_v10 = vrot.slane %v2907_v60, %v5921_v54 }
 0x724   : > { %v2846_v13 = vrot.slane %v2838_v2, %v5921_v54  ;;  %v2853_v61 = vrot.slane %v2839_v3, %v5921_v54 }
 0x726   : > { %v4266_v4 = vpop.f32.mrb[16].mxu1 }
 0x727   : > { %v2922_v5 = vcombine.low %v4252_v56, %v4266_v4  ;;  %v2923_v6 = vcombine.high %v4252_v56, %v4266_v4  ;;  %v2829_v7 = vpop.f32.mrb[17].mxu1  ;;  %v3154_v4 = vld [vmem:[%s5775_s14 + $0x60] sm:$0xff] }
 0x728   : > { %v2854_v8 = vcombine.low %v2667_v41, %v2829_v7  ;;  %v2855_v9 = vcombine.high %v2667_v41, %v2829_v7 }
 0x729   : > { %v2930_v11 = vrot.slane %v2922_v5, %v5921_v54  ;;  %v2937_v12 = vrot.slane %v2923_v6, %v5921_v54  ;;  %v3155_v5 = vld [vmem:[%s5775_s14 + $0x68] sm:$0xff] }
 0x72a   : > { %v2862_v38 = vrot.slane %v2854_v8, %v5921_v54  ;;  %v2869_v14 = vrot.slane %v2855_v9, %v5921_v54 }
 0x72b   : > { %v2938_v15 = vcombine.low %v2914_v40, %v2930_v11  ;;  %v2939_v34 = vcombine.high %v2914_v40, %v2930_v11  ;;  %v2954_v35 = vcombine.low %v2921_v10, %v2937_v12  ;;  %v2955_v16 = vcombine.high %v2921_v10, %v2937_v12  ;;  %v3156_v40 = vld [vmem:[%s5775_s14 + $0x70] sm:$0xff]  ;;  %v3157_v10 = vld [vmem:[%s5775_s14 + $0x78] sm:$0xff] }
 0x72c   : > { %v2870_v37 = vcombine.low %v2846_v13, %v2862_v38  ;;  %v2871_v39 = vcombine.high %v2846_v13, %v2862_v38  ;;  %v2886_v17 = vcombine.low %v2853_v61, %v2869_v14  ;;  %v2887_v19 = vcombine.high %v2853_v61, %v2869_v14 }
 0x72d   : > { %v2946_v20 = vrot.slane %v2938_v15, %v5924_v63  ;;  %v2953_v21 = vrot.slane %v2939_v34, %v5924_v63  ;;  %v2962_v62 = vrot.slane %v2954_v35, %v5924_v63  ;;  %v2969_v36 = vrot.slane %v2955_v16, %v5924_v63 }
 0x72e   : > { %v2878_v22 = vrot.slane %v2870_v37, %v5924_v63  ;;  %v2885_v24 = vrot.slane %v2871_v39, %v5924_v63  ;;  %v2894_v18 = vrot.slane %v2886_v17, %v5924_v63  ;;  %v2901_v23 = vrot.slane %v2887_v19, %v5924_v63 }
 0x72f   : > { %v3042_v29 = vcombine.low %v2946_v20, %v2953_v21  ;;  %v3943_v25 = vcombine.high %v2946_v20, %v2953_v21  ;;  %v3058_v26 = vcombine.low %v2962_v62, %v2969_v36  ;;  %v3944_v30 = vcombine.high %v2962_v62, %v2969_v36 }
 0x730   : > { %v2974_v33 = vcombine.low %v2878_v22, %v2885_v24  ;;  %v3941_v27 = vcombine.high %v2878_v22, %v2885_v24  ;;  %v2990_v28 = vcombine.low %v2894_v18, %v2901_v23  ;;  %v3942_v31 = vcombine.high %v2894_v18, %v2901_v23 }
 0x731   : > { %v3049_v32 = vrot.slane %v3042_v29, %v5921_v54  ;;  %v3057_v42 = vrot.slane %v3943_v25, %v5921_v54  ;;  %v3065_v43 = vrot.slane %v3058_v26, %v5921_v54  ;;  %v3073_v58 = vrot.slane %v3944_v30, %v5921_v54  ;;  %v3945_v26 = vld [vmem:[%s861_s4] ss:$0 sm:$0xff]  ;;  %v4751_v30 = vld [vmem:[#allocation2 + $0x8] sm:$0xff]  ;;  %s6544_s4 = sld [smem:[#allocation43_spill]] }
 0x732   : > { %v2981_v0 = vrot.slane %v2974_v33, %v5921_v54  ;;  %v2989_v44 = vrot.slane %v3941_v27, %v5921_v54  ;;  %v2997_v45 = vrot.slane %v2990_v28, %v5921_v54  ;;  %v3005_v46 = vrot.slane %v3942_v31, %v5921_v54  ;;  %v4752_v28 = vld [vmem:[#allocation2] sm:$0xff] }
 0x733   : > { %v3075_v47 = vcombine.high %v3049_v32, %v3057_v42  ;;  %v3091_v48 = vcombine.high %v3065_v43, %v3073_v58  ;;  %v3074_v49 = vcombine.low %v3049_v32, %v3057_v42  ;;  %v3090_v51 = vcombine.low %v3065_v43, %v3073_v58  ;;  %v3285_v43 = vld [vmem:[%s5777_s26 + $0x8] sm:$0xff]  ;;  %v3287_v58 = vld [vmem:[%s5777_s26 + $0x18] sm:$0xff] }
 0x734   : > { %v3007_v52 = vcombine.high %v2981_v0, %v2989_v44  ;;  %v3023_v53 = vcombine.high %v2997_v45, %v3005_v46  ;;  %v3006_v55 = vcombine.low %v2981_v0, %v2989_v44  ;;  %v3022_v56 = vcombine.low %v2997_v45, %v3005_v46  ;;  %v3284_v0 = vld [vmem:[%s5777_s26] sm:$0xff]  ;;  %v3286_v45 = vld [vmem:[%s5777_s26 + $0x10] sm:$0xff]  ;;  %v3289_v46 = vld [vmem:[%s5777_s26 + $0x28] sm:$0xff] }
 0x735   : > { %v3089_v41 = vrot.slane %v3075_v47, %v5924_v63  ;;  %v3105_v57 = vrot.slane %v3091_v48, %v5924_v63  ;;  %v3082_v59 = vrot.slane %v3074_v49, %v5924_v63  ;;  %v3098_v54 = vrot.slane %v3090_v51, %v5924_v63  ;;  %v3291_v47 = vld [vmem:[%s5777_s26 + $0x38] sm:$0xff]  ;;  %v3288_v51 = vld [vmem:[%s5777_s26 + $0x20] sm:$0xff] }
 0x736   : > { %v3021_v60 = vrot.slane %v3007_v52, %v5924_v63  ;;  %v3037_v1 = vrot.slane %v3023_v53, %v5924_v63  ;;  %v3014_v2 = vrot.slane %v3006_v55, %v5924_v63  ;;  %v3030_v3 = vrot.slane %v3022_v56, %v5924_v63  ;;  %v3290_v52 = vld [vmem:[%s5777_s26 + $0x30] sm:$0xff]  ;;  %v3293_v53 = vld [vmem:[%s5777_s26 + $0x48] sm:$0xff]  ;;  %v3295_v55 = vld [vmem:[%s5777_s26 + $0x58] sm:$0xff] }
 0x737   : > { %v3108_v6 = vcombine.low %v3089_v41, %v3105_v57  ;;  %v3106_v7 = vcombine.low %v3082_v59, %v3098_v54  ;;  %v3107_v8 = vcombine.high %v3082_v59, %v3098_v54  ;;  %v3109_v9 = vcombine.high %v3089_v41, %v3105_v57  ;;  %v3292_v57 = vld [vmem:[%s5777_s26 + $0x40] sm:$0xff]  ;;  %v3294_v59 = vld [vmem:[%s5777_s26 + $0x50] sm:$0xff] }
 0x738   : > { %v3040_v11 = vcombine.low %v3021_v60, %v3037_v1  ;;  %v3039_v12 = vcombine.high %v3014_v2, %v3030_v3  ;;  %v3038_v13 = vcombine.low %v3014_v2, %v3030_v3  ;;  %v3041_v61 = vcombine.high %v3021_v60, %v3037_v1 }
 0x739   : > { %v4462_v38 = vpack.c.bf16 %v3155_v5, %v3154_v4  ;;  %v4466_v35 = vpack.c.bf16 %v3157_v10, %v3156_v40  ;;  %v4470_v44 = vpack.c.bf16 %v3287_v58, %v3285_v43  ;;  %v4472_v48 = vpack.c.bf16 %v3286_v45, %v3284_v0  ;;  %v3296_v40 = vld [vmem:[%s5777_s26 + $0x60] sm:$0xff]  ;;  %v3426_v43 = vld [vmem:[%s6544_s4 + $0x8] sm:$0xff]  ;;  %v3444_v0 = vld [vmem:[%s6544_s4 + $0x98] sm:$0xff] }
 0x73a   : > { %v4693_v14 = vpack.i.bf16 %v3108_v6, %v3040_v11  ;;  %v4688_v15 = vpack.i.bf16 %v3107_v8, %v3039_v12  ;;  %v4698_v34 = vpack.i.bf16 %v3109_v9, %v3041_v61  ;;  %v4474_v49 = vpack.c.bf16 %v3291_v47, %v3289_v46  ;;  %v3297_v8 = vld [vmem:[%s5777_s26 + $0x68] sm:$0xff]  ;;  %v3299_v9 = vld [vmem:[%s5777_s26 + $0x78] sm:$0xff]  ;;  %v3298_v11 = vld [vmem:[%s5777_s26 + $0x70] sm:$0xff] }
 0x73b   : > { %4463 = vmatprep.subr.bf16.mxu0 %v4462_v38  ;;  %4471 = vmatprep.subr.bf16.mxu1 %v4470_v44  ;;  %v4476_v56 = vpack.c.bf16 %v3290_v52, %v3288_v51  ;;  %v4478_v41 = vpack.c.bf16 %v3295_v55, %v3293_v53  ;;  %v4480_v54 = vpack.c.bf16 %v3294_v59, %v3292_v57  ;;  %v3303_v61 = vld [vmem:[%s5777_s26 + $0x98] sm:$0xff]  ;;  %v3443_v58 = vld [vmem:[%s6544_s4 + $0x90] sm:$0xff]  ;;  %v3428_v47 = vld [vmem:[%s6544_s4 + $0x18] sm:$0xff] }
 0x73c   : > { %4694 = vrot.lane.b32.xlu1 %v4693_v14, %s5177_s29  ;;  %4689 = vrot.lane.b32.xlu0 %v4688_v15, %s5178_s16  ;;  %v4482_v10 = vpack.c.bf16 %v3299_v9, %v3297_v8  ;;  %v4484_v12 = vpack.c.bf16 %v3298_v11, %v3296_v40  ;;  %v3302_v15 = vld [vmem:[%s5777_s26 + $0x90] sm:$0xff]  ;;  %v4506_v45 = vpack.c.bf16 %v3444_v0, %v3443_v58  ;;  %v3427_v46 = vld [vmem:[%s6544_s4 + $0x10] sm:$0xff]  ;;  %v3324_v58 = vsub.s32 1, %v5918_v50 }
 0x73d   : > { %4465 = vmatpush3.bf16.msra.mxu0 %v4462_v38  ;;  %4473 = vmatpush1.bf16.msra.mxu1 %v4472_v48  ;;  %v3300_v38 = vld [vmem:[%s5777_s26 + $0x80] sm:$0xff]  ;;  %v3445_v48 = vld [vmem:[%s6544_s4 + $0xa0] sm:$0xff]  ;;  %v4508_v51 = vpack.c.bf16 %v3428_v47, %v3427_v46  ;;  %v3430_v55 = vld [vmem:[%s6544_s4 + $0x28] sm:$0xff] }
 0x73e   : > { %4467 = vmatprep.subr.bf16.mxu0 %v4466_v35  ;;  %4475 = vmatprep.subr.bf16.mxu1 %v4474_v49  ;;  %v3446_v49 = vld [vmem:[%s6544_s4 + $0xa8] sm:$0xff]  ;;  %v3429_v53 = vld [vmem:[%s6544_s4 + $0x20] sm:$0xff] }
 0x73f   : > { %v4510_v52 = vpack.c.bf16 %v3446_v49, %v3445_v48 }
 0x740   : > { %4699 = vrot.lane.b32.xlu1 %v4698_v34, %s5176_s10  ;;  %v3305_v34 = vld [vmem:[%s5777_s26 + $0xa8] sm:$0xff] }
 0x741   : > { %4469 = vmatpush3.bf16.msra.mxu0 %v4466_v35  ;;  %4477 = vmatpush1.bf16.msra.mxu1 %v4476_v56  ;;  %v3307_v35 = vld [vmem:[%s5777_s26 + $0xb8] sm:$0xff]  ;;  %v4512_v56 = vpack.c.bf16 %v3430_v55, %v3429_v53 }
 0x742   : > { %4479 = vmatprep.subr.bf16.mxu1 %v4478_v41 }
 0x745   : > { %4481 = vmatpush1.bf16.msra.mxu1 %v4480_v54 }
 0x746   : > { %4483 = vmatprep.subr.bf16.mxu1 %v4482_v10 }
 0x749   : > { %4485 = vmatpush1.bf16.msra.mxu1 %v4484_v12 }
 0x7ae   : > { %v4695_v63 = vpop.permute.xlu1 %4694  ;;  %v4690_v16 = vpop.permute.xlu0 %4689 }
 0x7af   : > { %v4692_v37 = vunpack.i.h.bf16 %v4690_v16  ;;  %v4691_v39 = vunpack.i.l.bf16 %v4690_v16  ;;  %v4697_v17 = vunpack.i.h.bf16 %v4695_v63  ;;  %v4696_v19 = vunpack.i.l.bf16 %v4695_v63 }
 0x7b0   : > { %v5181_v63 = vmov 0.0   ;;  %v4488_v16 = vpack.c.bf16 %v3302_v15, %v3300_v38  ;;  %v3431_v38 = vld [vmem:[%s6544_s4 + $0x30] sm:$0xff] }
 0x7b1   : > { %v3135_v20 = vsel %vm2068_vm0, %v3106_v7, %v4692_v37  ;;  %v3134_v21 = vsel %vm2068_vm0, %v3038_v13, %v4691_v39  ;;  %v3301_v13 = vld [vmem:[%s5777_s26 + $0x88] sm:$0xff]  ;;  %3392 = vmatprep.mubr.f32.mxu1 %v5181_v63  ;;  %v4490_v37 = vpack.c.bf16 %v3307_v35, %v3305_v34  ;;  %v3304_v39 = vld [vmem:[%s5777_s26 + $0xa0] sm:$0xff]  ;;  %v3450_v34 = vld [vmem:[%s6544_s4 + $0xc8] sm:$0xff] }
 0x7b2   : > { %v4700_v62 = vpop.permute.xlu1 %4699  ;;  %v3137_v24 = vsel %vm3136_vm3, %v3134_v21, %v4696_v19  ;;  %v3138_v18 = vsel %vm3136_vm3, %v3135_v20, %v4697_v17  ;;  %v4486_v14 = vpack.c.bf16 %v3303_v61, %v3301_v13  ;;  %v3306_v17 = vld [vmem:[%s5777_s26 + $0xb0] sm:$0xff]  ;;  %v3309_v19 = vld [vmem:[%s5777_s26 + $0xc8] sm:$0xff]  ;;  %v3311_v20 = vld [vmem:[%s5777_s26 + $0xd8] sm:$0xff] }
 0x7b3   : > { %v4702_v36 = vunpack.i.h.bf16 %v4700_v62  ;;  %v4701_v22 = vunpack.i.l.bf16 %v4700_v62  ;;  %v4492_v21 = vpack.c.bf16 %v3306_v17, %v3304_v39  ;;  %v4494_v62 = vpack.c.bf16 %v3311_v20, %v3309_v19  ;;  %v3448_v13 = vld [vmem:[%s6544_s4 + $0xb8] sm:$0xff]  ;;  %v3451_v39 = vld [vmem:[%s6544_s4 + $0xd0] sm:$0xff] }
 0x7b4   : > { %4487 = vmatprep.subr.bf16.mxu1 %v4486_v14  ;;  %v3432_v14 = vld [vmem:[%s6544_s4 + $0x38] sm:$0xff]  ;;  %v3435_v20 = vld [vmem:[%s6544_s4 + $0x50] sm:$0xff] }
 0x7b5   : > { %v3140_v23 = vsel %vm3139_vm4, %v3137_v24, %v4701_v22  ;;  %v3141_v29 = vsel %vm3139_vm4, %v3138_v18, %v4702_v36  ;;  %4489 = vmatpush1.bf16.msra.mxu1 %v4488_v16  ;;  %v3308_v36 = vld [vmem:[%s5777_s26 + $0xc0] sm:$0xff]  ;;  %v3310_v22 = vld [vmem:[%s5777_s26 + $0xd0] sm:$0xff]  ;;  %v3313_v24 = vld [vmem:[%s5777_s26 + $0xe8] sm:$0xff]  ;;  %v4516_v15 = vpack.c.bf16 %v3432_v14, %v3431_v38 }
 0x7b6   : > { %4299 = vmatprep.mubr.f32.mxu0 %v3140_v23  ;;  %4491 = vmatprep.subr.bf16.mxu1 %v4490_v37  ;;  %v3315_v18 = vld [vmem:[%s5777_s26 + $0xf8] sm:$0xff]  ;;  %v4496_v23 = vpack.c.bf16 %v3310_v22, %v3308_v36  ;;  %v3452_v17 = vld [vmem:[%s6544_s4 + $0xd8] sm:$0xff]  ;;  %v3453_v36 = vld [vmem:[%s6544_s4 + $0xe0] sm:$0xff] }
 0x7b7   : > { %4300 = vmatmul.mubr.f32.vlgmr.msra.gmra.mrb[4].mxu0 %v3141_v29  ;;  %v4498_v29 = vpack.c.bf16 %v3315_v18, %v3313_v24  ;;  %v3434_v16 = vld [vmem:[%s6544_s4 + $0x48] sm:$0xff]  ;;  %v4522_v19 = vpack.c.bf16 %v3452_v17, %v3451_v39  ;;  %v3437_v24 = vld [vmem:[%s6544_s4 + $0x60] sm:$0xff] }
 0x7b8   : > { %v3454_v22 = vld [vmem:[%s6544_s4 + $0xe8] sm:$0xff]  ;;  %v3948_v14 = vld [vmem:[%s754_s23] ss:$0 sm:$0xff] }
 0x7b9   : > { %4493 = vmatpush1.bf16.msra.mxu1 %v4492_v21  ;;  %v3436_v21 = vld [vmem:[%s6544_s4 + $0x58] sm:$0xff]  ;;  %v4526_v18 = vpack.c.bf16 %v3454_v22, %v3453_v36 }
 0x7ba   : > { %4495 = vmatprep.subr.bf16.mxu1 %v4494_v62  ;;  %v4524_v62 = vpack.c.bf16 %v3436_v21, %v3435_v20 }
 0x7bd   : > { %4497 = vmatpush1.bf16.msra.mxu1 %v4496_v23  ;;  %v3438_v23 = vld [vmem:[%s6544_s4 + $0x68] sm:$0xff] }
 0x7be   : > { %4499 = vmatprep.subr.bf16.mxu1 %v4498_v29  ;;  %v3455_v29 = vld [vmem:[%s6544_s4 + $0xf0] sm:$0xff] }
 0x88a   : > { %v4301_v25 = vpop.f32.mrb[4].mxu0 }
 0x88b   : > { %v3234_v33 = vadd.f32 %v4751_v30, %v4301_v25  ;;  %v3224_v27 = vpop.f32.mrb[5].mxu0  ;;  %v3312_v25 = vld [vmem:[%s5777_s26 + $0xe0] sm:$0xff] }
 0x88c   : > { %v3233_v31 = vadd.f32 %v4752_v28, %v3224_v27  ;;  %v3442_v27 = vld [vmem:[%s6544_s4 + $0x88] sm:$0xff]  ;;  %v3425_v28 = vld [vmem:[%s6544_s4] sm:$0xff] }
 0x88d   : > { %v6222_v32 = vadd.f32 %v3945_v26, %v3234_v33  ;;  %v3441_v33 = vld [vmem:[%s6544_s4 + $0x80] sm:$0xff]  ;;  %v4504_v44 = vpack.c.bf16 %v3426_v43, %v3425_v28 }
 0x88e   : > { %v6224_v42 = vadd.f32 %v3945_v26, %v3233_v31  ;;  %v3314_v26 = vld [vmem:[%s5777_s26 + $0xf0] sm:$0xff]  ;;  %v4502_v31 = vpack.c.bf16 %v3442_v27, %v3441_v33  ;;  %v3439_v33 = vld [vmem:[%s6544_s4 + $0x70] sm:$0xff]  ;;  %v3440_v27 = vld [vmem:[%s6544_s4 + $0x78] sm:$0xff] }
 0x88f   : > { %3248 = vadd.xlane.f32.xlu0 %v6222_v32  ;;  %v4500_v30 = vpack.c.bf16 %v3314_v26, %v3312_v25  ;;  %v3456_v25 = vld [vmem:[%s6544_s4 + $0xf8] sm:$0xff]  ;;  %v4528_v26 = vpack.c.bf16 %v3438_v23, %v3437_v24  ;;  %v4532_v28 = vpack.c.bf16 %v3440_v27, %v3439_v33 }
 0x890   : > { %3246 = vadd.xlane.f32.xlu1 %v6224_v42  ;;  %4503 = vmatprep.subr.bf16.mxu0 %v4502_v31  ;;  %v3320_v31 = vsub.s32 0, %v5918_v50 }
 0x891   : > { %4501 = vmatpush1.bf16.msra.mxu1 %v4500_v30  ;;  %4505 = vmatpush3.bf16.msra.mxu0 %v4504_v44  ;;  %v4530_v30 = vpack.c.bf16 %v3456_v25, %v3455_v29 }
 0x892   : > { %4507 = vmatprep.subr.bf16.mxu0 %v4506_v45 }
 0x895   : > { %4509 = vmatpush3.bf16.msra.mxu0 %v4508_v51 }
 0x896   : > { %4511 = vmatprep.subr.bf16.mxu0 %v4510_v52 }
 0x899   : > { %4513 = vmatpush3.bf16.msra.mxu0 %v4512_v56 }
 0x91c   : > { %v3249_v60 = vpop.xlane.xlu0 %3248 }
 0x91d   : > { %v3247_v1 = vpop.xlane.xlu1 %3246  ;;  %v3251_v2 = vmul.f32 0.0078125, %v3249_v60 }
 0x91e   : > { %v3250_v3 = vmul.f32 0.0078125, %v3247_v1 }
 0x91f   : > { %v6244_v5 = vsub.f32 %v6222_v32, %v3251_v2 }
 0x920   : > { %v6241_v4 = vsub.f32 %v6224_v42, %v3250_v3  ;;  %v3946_v3 = vld [vmem:[%s864_s21] ss:$0 sm:$0xff]  ;;  %s6547_s21 = sld [smem:[#allocation42_spill]] }
 0x921   : > { %v3255_v7 = vmul.f32 %v6244_v5, %v6244_v5 }
 0x922   : > { %v3254_v6 = vmul.f32 %v6241_v4, %v6241_v4 }
 0x924   : > { %3256 = vadd.xlane.f32.xlu0 %v3254_v6 }
 0x926   : > { %v3316_v43 = vld [vmem:[%s6547_s21] sm:$0x3] }
 0x927   : > { %v3321_v0 = vrot.slane %v3316_v43, %v3320_v31  ;;  %v3325_v44 = vrot.slane %v3316_v43, %v3324_v58 }
 0x928   : > { %3258 = vadd.xlane.f32.xlu0 %v3255_v7  ;;  %v3947_v7 = vld [vmem:[%s867_s18] ss:$0 sm:$0xff] }
 0x9b1   : > { %v3257_v41 = vpop.xlane.xlu0 %3256 }
 0x9b2   : > { %v3260_v57 = vmul.f32 0.0078125, %v3257_v41 }
 0x9b4   : > { %v3262_v59 = vadd.f32 1e-05, %v3260_v57 }
 0x9b5   : > { %v3259_v54 = vpop.xlane.xlu0 %3258 }
 0x9b6   : > { %4739 = vrsqrt.f32 %v3262_v59  ;;  %v3261_v60 = vmul.f32 0.0078125, %v3259_v54 }
 0x9b8   : > { %v3263_v1 = vadd.f32 1e-05, %v3261_v60 }
 0x9ba   : > { %4741 = vrsqrt.f32 %v3263_v1 }
 0x9c0   : > { %v4740_v2 = vpop.eup %4739 }
 0x9c1   : > { %v3266_v6 = vmul.f32 %v4740_v2, %v6241_v4  ;;  %v3447_v4 = vld [vmem:[%s6544_s4 + $0xb0] sm:$0xff] }
 0x9c2   : > { %v4514_v61 = vpack.c.bf16 %v3448_v13, %v3447_v4 }
 0x9c3   : > { %v3274_v8 = vmul.f32 %v3946_v3, %v3266_v6 }
 0x9c4   : > { %v4742_v9 = vpop.eup %4741  ;;  %4515 = vmatprep.subr.bf16.mxu0 %v4514_v61 }
 0x9c5   : > { %v3282_v40 = vadd.f32 %v3947_v7, %v3274_v8  ;;  %v3267_v10 = vmul.f32 %v4742_v9, %v6244_v5  ;;  %4517 = vmatpush3.bf16.msra.mxu0 %v4516_v15  ;;  %v3449_v5 = vld [vmem:[%s6544_s4 + $0xc0] sm:$0xff] }
 0x9c6   : > { %v4518_v35 = vpack.c.bf16 %v3450_v34, %v3449_v5 }
 0x9c7   : > { %3393 = vmatmul.mubr.f32.vlgmr.msra.gmra.mrb[18].mxu1 %v3282_v40  ;;  %v3275_v11 = vmul.f32 %v3946_v3, %v3267_v10 }
 0x9c8   : > { %3398 = vmatprep.mubr.f32.mxu1 %v5181_v63  ;;  %v3433_v63 = vld [vmem:[%s6544_s4 + $0x40] sm:$0xff]  ;;  %4519 = vmatprep.subr.bf16.mxu0 %v4518_v35 }
 0x9c9   : > { %v3283_v12 = vadd.f32 %v3947_v7, %v3275_v11  ;;  %v4520_v37 = vpack.c.bf16 %v3434_v16, %v3433_v63 }
 0x9cb   : > { %3399 = vmatmul.mubr.f32.gmra.mrb[20].mxu1 %v3283_v12  ;;  %4521 = vmatpush3.bf16.msra.mxu0 %v4520_v37 }
 0x9cc   : > { %4523 = vmatprep.subr.bf16.mxu0 %v4522_v19 }
 0x9cf   : > { %4525 = vmatpush3.bf16.msra.mxu0 %v4524_v62 }
 0x9d0   : > { %4527 = vmatprep.subr.bf16.mxu0 %v4526_v18 }
 0x9d3   : > { %4529 = vmatpush3.bf16.msra.mxu0 %v4528_v26 }
 0x9d4   : > { %4531 = vmatprep.subr.bf16.mxu0 %v4530_v30 }
 0x9d7   : > { %4533 = vmatpush3.bf16.msra.mxu0 %v4532_v28 }
 0xa9a   : > { %v3394_v45 = vpop.f32.mrb[18].mxu1 }
 0xa9b   : > { %v3395_v46 = vadd.f32 %v3394_v45, %v3321_v0  ;;  %v3396_v47 = vpop.f32.mrb[19].mxu1 }
 0xa9c   : > { %v3397_v48 = vadd.f32 %v3396_v47, %v3325_v44 }
 0xa9d   : > { %v3409_v49 = vmul.f32 0.70710677, %v3395_v46  ;;  %v3405_v2 = vmul.f32 0.5, %v3395_v46 }
 0xa9e   : > { %v3410_v51 = vmul.f32 0.70710677, %v3397_v48  ;;  %v3400_v52 = vpop.f32.mrb[20].mxu1  ;;  %v3406_v60 = vmul.f32 0.5, %v3397_v48 }
 0xa9f   : > { %4743 = verf.f32 %v3409_v49  ;;  %v3401_v53 = vadd.f32 %v3400_v52, %v3321_v0  ;;  %v3402_v55 = vpop.f32.mrb[21].mxu1 }
 0xaa0   : > { %4745 = verf.f32 %v3410_v51  ;;  %v3403_v56 = vadd.f32 %v3402_v55, %v3325_v44 }
 0xaa1   : > { %v3411_v41 = vmul.f32 0.70710677, %v3401_v53  ;;  %v3407_v11 = vmul.f32 0.5, %v3401_v53 }
 0xaa2   : > { %v3412_v57 = vmul.f32 0.70710677, %v3403_v56  ;;  %v3408_v40 = vmul.f32 0.5, %v3403_v56 }
 0xaa3   : > { %4747 = verf.f32 %v3411_v41 }
 0xaa4   : > { %4749 = verf.f32 %v3412_v57 }
 0xaa9   : > { %v4744_v59 = vpop.eup %4743 }
 0xaaa   : > { %v4746_v50 = vpop.eup %4745  ;;  %v3417_v54 = vadd.f32 1.0, %v4744_v59 }
 0xaab   : > { %v3418_v1 = vadd.f32 1.0, %v4746_v50 }
 0xaac   : > { %v3421_v8 = vmul.f32 %v3417_v54, %v3405_v2 }
 0xaad   : > { %v4748_v3 = vpop.eup %4747  ;;  %v3422_v6 = vmul.f32 %v3418_v1, %v3406_v60 }
 0xaae   : > { %v4750_v7 = vpop.eup %4749  ;;  %v3419_v9 = vadd.f32 1.0, %v4748_v3 }
 0xaaf   : > { %v3420_v10 = vadd.f32 1.0, %v4750_v7  ;;  %3521 = vmatprep.mubr.f32.mxu0 %v3422_v6 }
 0xab0   : > { %3522 = vmatmul.mubr.f32.vlgmr.msra.gmra.mrb[6].mxu0 %v3421_v8  ;;  %v3423_v4 = vmul.f32 %v3419_v9, %v3407_v11 }
 0xab1   : > { %v3424_v12 = vmul.f32 %v3420_v10, %v3408_v40 }
 0xab3   : > { %3526 = vmatprep.mubr.f32.mxu0 %v3424_v12 }
 0xab4   : > { %3527 = vmatmul.mubr.f32.gmra.mrb[8].mxu0 %v3423_v4 }
 0xb83   : > { %v4100_v13 = vpop.f32.mrb[6].mxu0 }
 0xb84   : > { %v4101_v61 = vpop.f32.mrb[7].mxu0 }
 0xb85   : > { %v4102_v38 = vadd.f32 %v4101_v61, %v4100_v13 }
 0xb87   : > { %v3532_v15 = vadd.f32 %v4102_v38, %v6224_v42  ;;  %v4103_v5 = vpop.f32.mrb[8].mxu0 }
 0xb88   : > { %v4104_v34 = vpop.f32.mrb[9].mxu0 }
 0xb89   : > { %v3541_v35 = vadd.f32 %v3948_v14, %v3532_v15  ;;  %v4105_v63 = vadd.f32 %v4104_v34, %v4103_v5  ;;  %3548 = sbr.rel (%p3949_p11) target bundleno = 2960 (0xb90), region = 120 }
 0xb8b   : > { %3543 = vst [vmem:[#allocation2] sm:$0xff] %v3541_v35  ;;  %v3533_v16 = vadd.f32 %v4105_v63, %v6222_v32  ;;  %3549 = vst [vmem:[%s5819_s15] sm:$0xff] (!%p3949_p11), %v3541_v35 }
 0xb8d   : > { %v3542_v37 = vadd.f32 %v3948_v14, %v3533_v16 }
 0xb8f   : > { %3544 = vst [vmem:[#allocation2 + $0x8] sm:$0xff] %v3542_v37  ;;  %3550 = vst [vmem:[%s5819_s15 + $0x8] sm:$0xff] (!%p3949_p11), %v3542_v37 }
 0xb90 PF: > { %s6549_s23 = sld [smem:[#allocation31_spill]]  ;;  %s6550_s25 = sld [smem:[#allocation35_spill]] }
 0xb91   : > { %s6551_s22 = sld [smem:[#allocation58_spill]]  ;;  %s3565_s30 = sshll.u32 %s5819_s15, 4  ;;  %s6333_s30 = int_to_ptr.vmem [resolvable:$true] %s3565_s30 }
 0xb92   : > { %s3552_s17 = scalar_lea.sflag [#allocation5], %s5743_s20  ;;  %s5023_s8 = scalar_lea.vmem %s6333_s30, 256 }
 0xb93   : > { %p5024_p1 = scmp.ne.s32.totalorder %s6333_s30, %s5023_s8  ;;  %s5182_s6 = smov [#allocation18]  }
 0xb94   : > { %s5027_s13 = sshll.u32 %s5182_s6, 4  ;;  %s5028_s13 = int_to_ptr.vmem [resolvable:$false] %s5027_s13 }
 0xb95   : > { %s5029_s1 = scalar_lea.vmem %s5028_s13, 512  ;;  %p5030_p2 = scmp.lt.s32.totalorder %s6333_s30, %s5028_s13 }
 0xb96   : > { %s3963_s5 = sshll.u32 %s6549_s23, 8  ;;  %p6553_p7 = scmp.ne.s32.totalorder %s6550_s25, 0 }
 0xb97   : > { %s6552_s28 = smov %s6551_s22  ;;  %s6330_s18 = scalar_lea.hbm %s6551_s22, %s3963_s5 }
 0xb98   : > { %p5025_p3 = pnand %p5024_p1, %p6553_p7  ;;  %p5031_p0 = scmp.lt.s32.totalorder %s5029_s1, %s5023_s8 }
 0xb9a   : > { %p5026_p4 = pneg %p5025_p3  ;;  %p5032_p10 = por %p5031_p0, %p5030_p2 }
 0xb9c   : > { %p5033_p12 = pnand %p5032_p10, %p5026_p4 }
 0xb9e   : > { %5036 = shalt.err (!%p5033_p12)
}
 0xb9f   : > { %s5037_s15 = scalar_lea.hbm %s6330_s18, 256  ;;  %s5041_s16 = scalar_lea.hbm %s6552_s28, 512 }
 0xba0   : > { %p5038_p5 = scmp.ne.s32.totalorder %s6330_s18, %s5037_s15  ;;  %p5042_p13 = scmp.lt.u32.totalorder %s6330_s18, %s6552_s28 }
 0xba1   : > { %p5043_p6 = scmp.lt.u32.totalorder %s5041_s16, %s5037_s15  ;;  %p5045_p1 = scmp.lt.u32.totalorder %s5037_s15, %s6330_s18 }
 0xba2   : > { %p5039_p9 = pnand %p5038_p5, %p6553_p7 }
 0xba3   : > { %p5044_p11 = por %p5043_p6, %p5042_p13 }
 0xba4   : > { %p5040_p8 = pneg %p5039_p9 }
 0xba5   : > { %p5046_p3 = por %p5045_p1, %p5044_p11 }
 0xba7   : > { %p5047_p4 = pnand %p5046_p3, %p5040_p8 }
 0xba9   : > { %5050 = shalt.err (!%p5047_p4)
}
 0xbaa   : > { %s5183_s14 = smov 128   ;;  %s5184_s4 = smov 8  }
 0xbab   : > { %4552 = dma.vmem_to_hbm [thread:$0]  (%p6553_p7), %s6333_s30, 256, %s6330_s18, %s3552_s17, %s5183_s14, %s5183_s14, %s5184_s4  }
 0xbac PF: > { %s6554_s26 = sld [smem:[#allocation34_spill]]  ;;  %s6555_s12 = sld [smem:[#allocation27_spill]] }
 0xbad   : > { %s6556_s19 = sld [smem:[#allocation41_spill]] }
 0xbb2   : > { %p4587_p2 = scmp.ge.s32.totalorder %s6554_s26, 2  ;;  %s3580_s3 = sand.u32 1, %s6555_s12  }
 0xbb3   : > { %p6557_p0 = scmp.ne.s32.totalorder %s6556_s19, 0  ;;  %s3581_s7 = scalar_lea.sflag [#allocation5], %s3580_s3 }
 0xbb5   : > { %p4583_p10 = pnand %p4587_p2, %p6557_p0 }
 0xbb7   : > { %5116 = dma.done.wait (!%p4583_p10), %s3581_s7, 256  }
 0xbb8   : > { %5118 = vsyncadd (!%p4583_p10), %s3581_s7, 4294967040  ;;  %s42_s23 = sadd.s32 1, %s6554_s26   ;;  %s6558_s29 = sld [smem:[#allocation25_spill]] }
 0xbb9   : > { %p39_p12 = scmp.ge.s32.totalorder %s42_s23, 6   ;;  %s6559_s30 = sld [smem:[#allocation26_spill]] }
 0xbba   : > { %s6560_s15 = sld [smem:[#allocation39_spill]]  ;;  %s6561_s16 = sld [smem:[#allocation28_spill]] }
 0xbbb   : > { %s6562_s17 = sld [smem:[#allocation29_spill]]  ;;  %s6563_s18 = sld [smem:[#allocation40_spill]] }
 0xbbc   : > { %s6564_s19 = sld [smem:[#allocation32_spill]]  ;;  %s6565_s20 = sld [smem:[#allocation33_spill]] }
 0xbbd   : > { %s6566_s21 = sld [smem:[#allocation37_spill]]  ;;  %s6567_s22 = sld [smem:[#allocation38_spill]] }
 0xbbe   :  { %41 = sbr.rel (!%p39_p12) target bundleno = 33 (0x21), region = 240 }
 0xbc5   :  { %3586 = vsyncpa [#allocation4], 1 }
 0xbc6   :  { %3588 = vsyncpa [#allocation4 + $0x1], 1 }
 0xbc7   :  { %3589 = vsyncpa [#allocation7], 1 }
 0xbc8   :  { %3591 = vsyncpa [#allocation7 + $0x1], 1 }
 0xbc9   :  { %3592 = vsyncpa [#allocation10], 1 }
 0xbca   :  { %3594 = vsyncpa [#allocation10 + $0x1], 1 }
 0xbcb   :  { %3595 = vsyncpa [#allocation13], 1 }
 0xbcc   :  { %3597 = vsyncpa [#allocation13 + $0x1], 1 }
 0xbcd   :  { %3598 = vsyncpa [#allocation16], 1 }
 0xbce   :  { %3600 = vsyncpa [#allocation16 + $0x1], 1 }
 0xbcf   :  { %3601 = vsyncpa [#allocation5], 1 }
 0xbd0   :  { %3603 = vsyncpa [#allocation5 + $0x1], 1 }

</bundles_post_ra>
